<compile_context>
chip_gen: v5e
topology: v5e:2x2
jax: 0.10.0
libtpu: 0.0.40
codegen_flags: <defaults>
</compile_context>

<pallas_src>
import functools

import jax
import jax.numpy as jnp
from jax import lax
from jax.experimental import pallas as pl
from jax.experimental.pallas import tpu as pltpu


def _pick_row_tile(h, f, max_rows=64):
    """Largest divisor of h (<= max_rows) keeping the output row block 8-aligned."""
    for tq in range(min(h, max_rows), 0, -1):
        if h % tq == 0 and (tq * f) % 8 == 0:
            return tq
    return h  # single tile: block extent == full array extent, always legal


def _make_kernel(c1, f, k, tq, w, ow):
    """Fused (folded 1x1 conv + ConvTranspose2d) kernel for one row tile."""
    p = f // 2

    def kernel(w_ref, x_ref, s_ref, t_ref, o_ref):
        # w_ref: (C1*K*K,)            SMEM  folded weights, row-major (c, ky, kx)
        # x_ref: (1,1,C1,TQ+2,W+2)    VMEM  input rows for this tile (+1 halo/side)
        # s_ref: (f, W, OW)           VMEM  0/1 lane scatter:  col q*f+rx <- phase rx
        # t_ref: (f, TQ*f, TQ)        VMEM  0/1 row  scatter:  row t*f+ry <- phase ry
        # o_ref: (1,1,TQ*f,OW)
        x_cache = {}

        def x_slab(c, oy, ox):
            # hoist & dedupe the (few, statically-offset) input slices
            key = (c, oy, ox)
            if key not in x_cache:
                x_cache[key] = x_ref[0, 0, c, oy:oy + tq, ox:ox + w]
            return x_cache[key]

        out = jnp.zeros((tq * f, ow), jnp.float32)
        for ry in range(f):                       # output row phase
            ky0 = (ry + p) % f
            oy0 = 1 + (ry + p) // f
            b = jnp.zeros((tq, ow), jnp.float32)
            for rx in range(f):                   # output column phase
                kx0 = (rx + p) % f
                ox0 = 1 + (rx + p) // f
                a = jnp.zeros((tq, w), jnp.float32)
                # only the 2x2 taps that align with real inputs for this phase
                for dy in range(2):
                    for dx in range(2):
                        for c in range(c1):
                            wv = w_ref[c * k * k + (ky0 + dy * f) * k + (kx0 + dx * f)]
                            a = a + wv * x_slab(c, oy0 - dy, ox0 - dx)
                # MXU scatter: phase-rx values land at lanes q*f + rx (dense output)
                b = b + jnp.dot(a, s_ref[rx], preferred_element_type=jnp.float32)
            # MXU scatter: phase-ry rows land at sublanes t*f + ry
            out = out + jnp.dot(t_ref[ry], b, preferred_element_type=jnp.float32)
        o_ref[0, 0, :, :] = out

    return kernel


@functools.partial(jax.jit, static_argnames=("factor",))
def sidebranch_forward(x, conv_w, conv_b, up_w, *, factor):
    n, c, h, w = x.shape
    f = factor
    if f % 2 != 0:
        # TODO(synk): odd factor gives OH = H*f + 1 (extra q-block at the border).
        raise NotImplementedError("sidebranch_forward: factor must be even")
    k = 2 * f
    oh, ow = h * f, w * f
    c1 = c + 1
    fw = jnp.float32

    # ---- fold Conv2d(C->21, k=1) + bias into the ConvTranspose2d weights (exact)
    w_eff = jnp.einsum("oc,oyx->cyx",
                       conv_w[:, :, 0, 0].astype(fw), up_w[:, 0].astype(fw))   # (C,K,K)
    w_bias = jnp.einsum("o,oyx->yx", conv_b.astype(fw), up_w[:, 0].astype(fw))  # (K,K)
    w_aug = jnp.concatenate([w_eff, w_bias[None]], axis=0)                      # (C+1,K,K)
    w_flat = w_aug.reshape(-1)

    # ---- augment x with a ones channel (carries the bias, incl. edge effects),
    #      zero-pad spatially by 1 (the only out-of-range tap offset is +-1 pixel)
    xa = jnp.concatenate([x.astype(fw), jnp.ones((n, 1, h, w), fw)], axis=1)
    xp = jnp.pad(xa, ((0, 0), (0, 0), (1, 1), (1, 1)))          # (N, C1, H+2, W+2)

    # ---- row tiling (overlapping 2-row-halo windows, materialized on the small input)
    tq = _pick_row_tile(h, f)
    nt = h // tq
    if nt == 1:
        xt = xp[:, None]                                        # (N,1,C1,H+2,W+2)
    else:
        xt = jnp.stack([xp[:, :, i * tq:i * tq + tq + 2, :] for i in range(nt)],
                       axis=1)                                  # (N,nt,C1,TQ+2,W+2)
    wp = w + 2
    oht = tq * f

    # ---- 0/1 scatter matrices used to interleave the f*f phases on the MXU
    s_mat = (jnp.arange(ow)[None, None, :]
             == jnp.arange(w)[None, :, None] * f
             + jnp.arange(f)[:, None, None]).astype(fw)          # (f, W, OW)
    t_mat = (jnp.arange(oht)[None, :, None]
             == jnp.arange(tq)[None, None, :] * f
             + jnp.arange(f)[:, None, None]).astype(fw)          # (f, TQ*f, TQ)

    out = pl.pallas_call(
        _make_kernel(c1, f, k, tq, w, ow),
        out_shape=jax.ShapeDtypeStruct((n, 1, oh, ow), fw),
        grid=(n, nt),
        in_specs=[
            pl.BlockSpec(memory_space=pltpu.MemorySpace.SMEM),                 # folded weights
            pl.BlockSpec((1, 1, c1, tq + 2, wp), lambda b, i: (b, i, 0, 0, 0)),  # input rows
            pl.BlockSpec((f, w, ow), lambda b, i: (0, 0, 0)),                  # lane scatter
            pl.BlockSpec((f, oht, tq), lambda b, i: (0, 0, 0)),                # row scatter
        ],
        out_specs=pl.BlockSpec((1, 1, oht, ow), lambda b, i: (b, 0, i, 0)),
        compiler_params=pltpu.CompilerParams(
            dimension_semantics=("parallel", "parallel")),
    )(w_flat, xt, s_mat, t_mat)
    return out


# Pure-JAX reference (XLA convs, same semantics as the PyTorch module).
def sidebranch_reference(x, conv_w, conv_b, up_w, factor):
    y = lax.conv_general_dilated(
        x, conv_w, (1, 1), "VALID", dimension_numbers=("NCHW", "OIHW", "NCHW")
    ) + conv_b.reshape(1, -1, 1, 1)
    k = 2 * factor
    p = factor // 2
    lohi = k - 1 - p
    wt = jnp.transpose(up_w[:, :, ::-1, ::-1], (1, 0, 2, 3))  # (1, 21, K, K)
    return lax.conv_general_dilated(
        y, wt, (1, 1), ((lohi, lohi), (lohi, lohi)),
        lhs_dilation=(factor, factor),
        dimension_numbers=("NCHW", "OIHW", "NCHW"))


if __name__ == "__main__":
    N, C, H, W = 2, 4, 16, 16
    factor = 2
    OC = 21
    K = 2 * factor

    key = jax.random.PRNGKey(0)
    kx, kw1, kb1, kw2 = jax.random.split(key, 4)

    x = jax.random.normal(kx, (N, C, H, W), dtype=jnp.float32)
    conv_w = jax.random.normal(kw1, (OC, C, 1, 1), dtype=jnp.float32) * 0.1
    conv_b = jax.random.normal(kb1, (OC,), dtype=jnp.float32) * 0.1
    up_w = jax.random.normal(kw2, (OC, 1, K, K), dtype=jnp.float32) * 0.1

    out = sidebranch_forward(x, conv_w, conv_b, up_w, factor=factor)
    out = jax.block_until_ready(out)

    ref = sidebranch_reference(x, conv_w, conv_b, up_w, factor)
    assert out.shape == (N, 1, H * factor, W * factor), out.shape
    assert jnp.allclose(out, ref, atol=1e-4, rtol=1e-4), float(
        jnp.max(jnp.abs(out - ref)))

    print("KERNEL_OK")
</pallas_src>

<mosaic_0001>
module attributes {stable_mosaic.version = 11 : i64} {
  func.func @kernel(%arg0: i32, %arg1: i32, %arg2: memref<80xf32, #tpu.memory_space<smem>>, %arg3: memref<1x1x5x18x18xf32, #tpu.memory_space<vmem>>, %arg4: memref<2x16x32xf32, #tpu.memory_space<vmem>>, %arg5: memref<2x32x16xf32, #tpu.memory_space<vmem>>, %arg6: memref<1x1x32x32xf32, #tpu.memory_space<vmem>>) attributes {dimension_semantics = [#tpu.dimension_semantics<parallel>, #tpu.dimension_semantics<parallel>], iteration_bounds = array<i64: 2, 1>, scalar_prefetch = 0 : i64, scratch_operands = 0 : i64, tpu.core_type = #tpu.core_type<tc>, window_params = [{transform_indices = @transform_0, window_bounds = array<i64: 80>}, {transform_indices = @transform_1, window_bounds = array<i64: 1, 1, 5, 18, 18>}, {pipeline_mode = #tpu.pipeline_mode<synchronous>, transform_indices = @transform_2, window_bounds = array<i64: 2, 16, 32>}, {pipeline_mode = #tpu.pipeline_mode<synchronous>, transform_indices = @transform_3, window_bounds = array<i64: 2, 32, 16>}, {transform_indices = @transform_4, window_bounds = array<i64: 1, 1, 32, 32>}]} {
    %cst = arith.constant 0.000000e+00 : f32
    %0 = vector.broadcast %cst : f32 to vector<32x32xf32>
    %cst_0 = arith.constant 0.000000e+00 : f32
    %1 = vector.broadcast %cst_0 : f32 to vector<16x32xf32>
    %cst_1 = arith.constant 0.000000e+00 : f32
    %2 = vector.broadcast %cst_1 : f32 to vector<16x16xf32>
    %c5 = arith.constant 5 : index
    %3 = memref.load %arg2[%c5] : memref<80xf32, #tpu.memory_space<smem>>
    %c0 = arith.constant 0 : index
    %c0_2 = arith.constant 0 : index
    %c0_3 = arith.constant 0 : index
    %c1 = arith.constant 1 : index
    %c1_4 = arith.constant 1 : index
    %4 = vector.load %arg3[%c0, %c0_2, %c0_3, %c1, %c1_4] : memref<1x1x5x18x18xf32, #tpu.memory_space<vmem>>, vector<1x1x1x16x16xf32>
    %5 = vector.shape_cast %4 : vector<1x1x1x16x16xf32> to vector<16x16xf32>
    %6 = vector.broadcast %3 : f32 to vector<16x16xf32>
    %7 = arith.mulf %6, %5 : vector<16x16xf32>
    %8 = arith.addf %2, %7 : vector<16x16xf32>
    %c21 = arith.constant 21 : index
    %9 = memref.load %arg2[%c21] : memref<80xf32, #tpu.memory_space<smem>>
    %c0_5 = arith.constant 0 : index
    %c0_6 = arith.constant 0 : index
    %c1_7 = arith.constant 1 : index
    %c1_8 = arith.constant 1 : index
    %c1_9 = arith.constant 1 : index
    %10 = vector.load %arg3[%c0_5, %c0_6, %c1_7, %c1_8, %c1_9] : memref<1x1x5x18x18xf32, #tpu.memory_space<vmem>>, vector<1x1x1x16x16xf32>
    %11 = vector.shape_cast %10 : vector<1x1x1x16x16xf32> to vector<16x16xf32>
    %12 = vector.broadcast %9 : f32 to vector<16x16xf32>
    %13 = arith.mulf %12, %11 : vector<16x16xf32>
    %14 = arith.addf %8, %13 : vector<16x16xf32>
    %c37 = arith.constant 37 : index
    %15 = memref.load %arg2[%c37] : memref<80xf32, #tpu.memory_space<smem>>
    %c0_10 = arith.constant 0 : index
    %c0_11 = arith.constant 0 : index
    %c2 = arith.constant 2 : index
    %c1_12 = arith.constant 1 : index
    %c1_13 = arith.constant 1 : index
    %16 = vector.load %arg3[%c0_10, %c0_11, %c2, %c1_12, %c1_13] : memref<1x1x5x18x18xf32, #tpu.memory_space<vmem>>, vector<1x1x1x16x16xf32>
    %17 = vector.shape_cast %16 : vector<1x1x1x16x16xf32> to vector<16x16xf32>
    %18 = vector.broadcast %15 : f32 to vector<16x16xf32>
    %19 = arith.mulf %18, %17 : vector<16x16xf32>
    %20 = arith.addf %14, %19 : vector<16x16xf32>
    %c53 = arith.constant 53 : index
    %21 = memref.load %arg2[%c53] : memref<80xf32, #tpu.memory_space<smem>>
    %c0_14 = arith.constant 0 : index
    %c0_15 = arith.constant 0 : index
    %c3 = arith.constant 3 : index
    %c1_16 = arith.constant 1 : index
    %c1_17 = arith.constant 1 : index
    %22 = vector.load %arg3[%c0_14, %c0_15, %c3, %c1_16, %c1_17] : memref<1x1x5x18x18xf32, #tpu.memory_space<vmem>>, vector<1x1x1x16x16xf32>
    %23 = vector.shape_cast %22 : vector<1x1x1x16x16xf32> to vector<16x16xf32>
    %24 = vector.broadcast %21 : f32 to vector<16x16xf32>
    %25 = arith.mulf %24, %23 : vector<16x16xf32>
    %26 = arith.addf %20, %25 : vector<16x16xf32>
    %c69 = arith.constant 69 : index
    %27 = memref.load %arg2[%c69] : memref<80xf32, #tpu.memory_space<smem>>
    %c0_18 = arith.constant 0 : index
    %c0_19 = arith.constant 0 : index
    %c4 = arith.constant 4 : index
    %c1_20 = arith.constant 1 : index
    %c1_21 = arith.constant 1 : index
    %28 = vector.load %arg3[%c0_18, %c0_19, %c4, %c1_20, %c1_21] : memref<1x1x5x18x18xf32, #tpu.memory_space<vmem>>, vector<1x1x1x16x16xf32>
    %29 = vector.shape_cast %28 : vector<1x1x1x16x16xf32> to vector<16x16xf32>
    %30 = vector.broadcast %27 : f32 to vector<16x16xf32>
    %31 = arith.mulf %30, %29 : vector<16x16xf32>
    %32 = arith.addf %26, %31 : vector<16x16xf32>
    %c7 = arith.constant 7 : index
    %33 = memref.load %arg2[%c7] : memref<80xf32, #tpu.memory_space<smem>>
    %c0_22 = arith.constant 0 : index
    %c0_23 = arith.constant 0 : index
    %c0_24 = arith.constant 0 : index
    %c1_25 = arith.constant 1 : index
    %c0_26 = arith.constant 0 : index
    %34 = vector.load %arg3[%c0_22, %c0_23, %c0_24, %c1_25, %c0_26] : memref<1x1x5x18x18xf32, #tpu.memory_space<vmem>>, vector<1x1x1x16x16xf32>
    %35 = vector.shape_cast %34 : vector<1x1x1x16x16xf32> to vector<16x16xf32>
    %36 = vector.broadcast %33 : f32 to vector<16x16xf32>
    %37 = arith.mulf %36, %35 : vector<16x16xf32>
    %38 = arith.addf %32, %37 : vector<16x16xf32>
    %c23 = arith.constant 23 : index
    %39 = memref.load %arg2[%c23] : memref<80xf32, #tpu.memory_space<smem>>
    %c0_27 = arith.constant 0 : index
    %c0_28 = arith.constant 0 : index
    %c1_29 = arith.constant 1 : index
    %c1_30 = arith.constant 1 : index
    %c0_31 = arith.constant 0 : index
    %40 = vector.load %arg3[%c0_27, %c0_28, %c1_29, %c1_30, %c0_31] : memref<1x1x5x18x18xf32, #tpu.memory_space<vmem>>, vector<1x1x1x16x16xf32>
    %41 = vector.shape_cast %40 : vector<1x1x1x16x16xf32> to vector<16x16xf32>
    %42 = vector.broadcast %39 : f32 to vector<16x16xf32>
    %43 = arith.mulf %42, %41 : vector<16x16xf32>
    %44 = arith.addf %38, %43 : vector<16x16xf32>
    %c39 = arith.constant 39 : index
    %45 = memref.load %arg2[%c39] : memref<80xf32, #tpu.memory_space<smem>>
    %c0_32 = arith.constant 0 : index
    %c0_33 = arith.constant 0 : index
    %c2_34 = arith.constant 2 : index
    %c1_35 = arith.constant 1 : index
    %c0_36 = arith.constant 0 : index
    %46 = vector.load %arg3[%c0_32, %c0_33, %c2_34, %c1_35, %c0_36] : memref<1x1x5x18x18xf32, #tpu.memory_space<vmem>>, vector<1x1x1x16x16xf32>
    %47 = vector.shape_cast %46 : vector<1x1x1x16x16xf32> to vector<16x16xf32>
    %48 = vector.broadcast %45 : f32 to vector<16x16xf32>
    %49 = arith.mulf %48, %47 : vector<16x16xf32>
    %50 = arith.addf %44, %49 : vector<16x16xf32>
    %c55 = arith.constant 55 : index
    %51 = memref.load %arg2[%c55] : memref<80xf32, #tpu.memory_space<smem>>
    %c0_37 = arith.constant 0 : index
    %c0_38 = arith.constant 0 : index
    %c3_39 = arith.constant 3 : index
    %c1_40 = arith.constant 1 : index
    %c0_41 = arith.constant 0 : index
    %52 = vector.load %arg3[%c0_37, %c0_38, %c3_39, %c1_40, %c0_41] : memref<1x1x5x18x18xf32, #tpu.memory_space<vmem>>, vector<1x1x1x16x16xf32>
    %53 = vector.shape_cast %52 : vector<1x1x1x16x16xf32> to vector<16x16xf32>
    %54 = vector.broadcast %51 : f32 to vector<16x16xf32>
    %55 = arith.mulf %54, %53 : vector<16x16xf32>
    %56 = arith.addf %50, %55 : vector<16x16xf32>
    %c71 = arith.constant 71 : index
    %57 = memref.load %arg2[%c71] : memref<80xf32, #tpu.memory_space<smem>>
    %c0_42 = arith.constant 0 : index
    %c0_43 = arith.constant 0 : index
    %c4_44 = arith.constant 4 : index
    %c1_45 = arith.constant 1 : index
    %c0_46 = arith.constant 0 : index
    %58 = vector.load %arg3[%c0_42, %c0_43, %c4_44, %c1_45, %c0_46] : memref<1x1x5x18x18xf32, #tpu.memory_space<vmem>>, vector<1x1x1x16x16xf32>
    %59 = vector.shape_cast %58 : vector<1x1x1x16x16xf32> to vector<16x16xf32>
    %60 = vector.broadcast %57 : f32 to vector<16x16xf32>
    %61 = arith.mulf %60, %59 : vector<16x16xf32>
    %62 = arith.addf %56, %61 : vector<16x16xf32>
    %c13 = arith.constant 13 : index
    %63 = memref.load %arg2[%c13] : memref<80xf32, #tpu.memory_space<smem>>
    %c0_47 = arith.constant 0 : index
    %c0_48 = arith.constant 0 : index
    %c0_49 = arith.constant 0 : index
    %c0_50 = arith.constant 0 : index
    %c1_51 = arith.constant 1 : index
    %64 = vector.load %arg3[%c0_47, %c0_48, %c0_49, %c0_50, %c1_51] : memref<1x1x5x18x18xf32, #tpu.memory_space<vmem>>, vector<1x1x1x16x16xf32>
    %65 = vector.shape_cast %64 : vector<1x1x1x16x16xf32> to vector<16x16xf32>
    %66 = vector.broadcast %63 : f32 to vector<16x16xf32>
    %67 = arith.mulf %66, %65 : vector<16x16xf32>
    %68 = arith.addf %62, %67 : vector<16x16xf32>
    %c29 = arith.constant 29 : index
    %69 = memref.load %arg2[%c29] : memref<80xf32, #tpu.memory_space<smem>>
    %c0_52 = arith.constant 0 : index
    %c0_53 = arith.constant 0 : index
    %c1_54 = arith.constant 1 : index
    %c0_55 = arith.constant 0 : index
    %c1_56 = arith.constant 1 : index
    %70 = vector.load %arg3[%c0_52, %c0_53, %c1_54, %c0_55, %c1_56] : memref<1x1x5x18x18xf32, #tpu.memory_space<vmem>>, vector<1x1x1x16x16xf32>
    %71 = vector.shape_cast %70 : vector<1x1x1x16x16xf32> to vector<16x16xf32>
    %72 = vector.broadcast %69 : f32 to vector<16x16xf32>
    %73 = arith.mulf %72, %71 : vector<16x16xf32>
    %74 = arith.addf %68, %73 : vector<16x16xf32>
    %c45 = arith.constant 45 : index
    %75 = memref.load %arg2[%c45] : memref<80xf32, #tpu.memory_space<smem>>
    %c0_57 = arith.constant 0 : index
    %c0_58 = arith.constant 0 : index
    %c2_59 = arith.constant 2 : index
    %c0_60 = arith.constant 0 : index
    %c1_61 = arith.constant 1 : index
    %76 = vector.load %arg3[%c0_57, %c0_58, %c2_59, %c0_60, %c1_61] : memref<1x1x5x18x18xf32, #tpu.memory_space<vmem>>, vector<1x1x1x16x16xf32>
    %77 = vector.shape_cast %76 : vector<1x1x1x16x16xf32> to vector<16x16xf32>
    %78 = vector.broadcast %75 : f32 to vector<16x16xf32>
    %79 = arith.mulf %78, %77 : vector<16x16xf32>
    %80 = arith.addf %74, %79 : vector<16x16xf32>
    %c61 = arith.constant 61 : index
    %81 = memref.load %arg2[%c61] : memref<80xf32, #tpu.memory_space<smem>>
    %c0_62 = arith.constant 0 : index
    %c0_63 = arith.constant 0 : index
    %c3_64 = arith.constant 3 : index
    %c0_65 = arith.constant 0 : index
    %c1_66 = arith.constant 1 : index
    %82 = vector.load %arg3[%c0_62, %c0_63, %c3_64, %c0_65, %c1_66] : memref<1x1x5x18x18xf32, #tpu.memory_space<vmem>>, vector<1x1x1x16x16xf32>
    %83 = vector.shape_cast %82 : vector<1x1x1x16x16xf32> to vector<16x16xf32>
    %84 = vector.broadcast %81 : f32 to vector<16x16xf32>
    %85 = arith.mulf %84, %83 : vector<16x16xf32>
    %86 = arith.addf %80, %85 : vector<16x16xf32>
    %c77 = arith.constant 77 : index
    %87 = memref.load %arg2[%c77] : memref<80xf32, #tpu.memory_space<smem>>
    %c0_67 = arith.constant 0 : index
    %c0_68 = arith.constant 0 : index
    %c4_69 = arith.constant 4 : index
    %c0_70 = arith.constant 0 : index
    %c1_71 = arith.constant 1 : index
    %88 = vector.load %arg3[%c0_67, %c0_68, %c4_69, %c0_70, %c1_71] : memref<1x1x5x18x18xf32, #tpu.memory_space<vmem>>, vector<1x1x1x16x16xf32>
    %89 = vector.shape_cast %88 : vector<1x1x1x16x16xf32> to vector<16x16xf32>
    %90 = vector.broadcast %87 : f32 to vector<16x16xf32>
    %91 = arith.mulf %90, %89 : vector<16x16xf32>
    %92 = arith.addf %86, %91 : vector<16x16xf32>
    %c15 = arith.constant 15 : index
    %93 = memref.load %arg2[%c15] : memref<80xf32, #tpu.memory_space<smem>>
    %c0_72 = arith.constant 0 : index
    %c0_73 = arith.constant 0 : index
    %c0_74 = arith.constant 0 : index
    %c0_75 = arith.constant 0 : index
    %c0_76 = arith.constant 0 : index
    %94 = vector.load %arg3[%c0_72, %c0_73, %c0_74, %c0_75, %c0_76] : memref<1x1x5x18x18xf32, #tpu.memory_space<vmem>>, vector<1x1x1x16x16xf32>
    %95 = vector.shape_cast %94 : vector<1x1x1x16x16xf32> to vector<16x16xf32>
    %96 = vector.broadcast %93 : f32 to vector<16x16xf32>
    %97 = arith.mulf %96, %95 : vector<16x16xf32>
    %98 = arith.addf %92, %97 : vector<16x16xf32>
    %c31 = arith.constant 31 : index
    %99 = memref.load %arg2[%c31] : memref<80xf32, #tpu.memory_space<smem>>
    %c0_77 = arith.constant 0 : index
    %c0_78 = arith.constant 0 : index
    %c1_79 = arith.constant 1 : index
    %c0_80 = arith.constant 0 : index
    %c0_81 = arith.constant 0 : index
    %100 = vector.load %arg3[%c0_77, %c0_78, %c1_79, %c0_80, %c0_81] : memref<1x1x5x18x18xf32, #tpu.memory_space<vmem>>, vector<1x1x1x16x16xf32>
    %101 = vector.shape_cast %100 : vector<1x1x1x16x16xf32> to vector<16x16xf32>
    %102 = vector.broadcast %99 : f32 to vector<16x16xf32>
    %103 = arith.mulf %102, %101 : vector<16x16xf32>
    %104 = arith.addf %98, %103 : vector<16x16xf32>
    %c47 = arith.constant 47 : index
    %105 = memref.load %arg2[%c47] : memref<80xf32, #tpu.memory_space<smem>>
    %c0_82 = arith.constant 0 : index
    %c0_83 = arith.constant 0 : index
    %c2_84 = arith.constant 2 : index
    %c0_85 = arith.constant 0 : index
    %c0_86 = arith.constant 0 : index
    %106 = vector.load %arg3[%c0_82, %c0_83, %c2_84, %c0_85, %c0_86] : memref<1x1x5x18x18xf32, #tpu.memory_space<vmem>>, vector<1x1x1x16x16xf32>
    %107 = vector.shape_cast %106 : vector<1x1x1x16x16xf32> to vector<16x16xf32>
    %108 = vector.broadcast %105 : f32 to vector<16x16xf32>
    %109 = arith.mulf %108, %107 : vector<16x16xf32>
    %110 = arith.addf %104, %109 : vector<16x16xf32>
    %c63 = arith.constant 63 : index
    %111 = memref.load %arg2[%c63] : memref<80xf32, #tpu.memory_space<smem>>
    %c0_87 = arith.constant 0 : index
    %c0_88 = arith.constant 0 : index
    %c3_89 = arith.constant 3 : index
    %c0_90 = arith.constant 0 : index
    %c0_91 = arith.constant 0 : index
    %112 = vector.load %arg3[%c0_87, %c0_88, %c3_89, %c0_90, %c0_91] : memref<1x1x5x18x18xf32, #tpu.memory_space<vmem>>, vector<1x1x1x16x16xf32>
    %113 = vector.shape_cast %112 : vector<1x1x1x16x16xf32> to vector<16x16xf32>
    %114 = vector.broadcast %111 : f32 to vector<16x16xf32>
    %115 = arith.mulf %114, %113 : vector<16x16xf32>
    %116 = arith.addf %110, %115 : vector<16x16xf32>
    %c79 = arith.constant 79 : index
    %117 = memref.load %arg2[%c79] : memref<80xf32, #tpu.memory_space<smem>>
    %c0_92 = arith.constant 0 : index
    %c0_93 = arith.constant 0 : index
    %c4_94 = arith.constant 4 : index
    %c0_95 = arith.constant 0 : index
    %c0_96 = arith.constant 0 : index
    %118 = vector.load %arg3[%c0_92, %c0_93, %c4_94, %c0_95, %c0_96] : memref<1x1x5x18x18xf32, #tpu.memory_space<vmem>>, vector<1x1x1x16x16xf32>
    %119 = vector.shape_cast %118 : vector<1x1x1x16x16xf32> to vector<16x16xf32>
    %120 = vector.broadcast %117 : f32 to vector<16x16xf32>
    %121 = arith.mulf %120, %119 : vector<16x16xf32>
    %122 = arith.addf %116, %121 : vector<16x16xf32>
    %c0_97 = arith.constant 0 : index
    %c0_98 = arith.constant 0 : index
    %c0_99 = arith.constant 0 : index
    %123 = vector.load %arg4[%c0_97, %c0_98, %c0_99] : memref<2x16x32xf32, #tpu.memory_space<vmem>>, vector<1x16x32xf32>
    %124 = vector.shape_cast %123 : vector<1x16x32xf32> to vector<16x32xf32>
    %cst_100 = arith.constant dense<0.000000e+00> : vector<16x32xf32>
    %125 = tpu.matmul %122, %124, %cst_100 {dimension_numbers = #tpu.dot_dimension_numbers<[1], [0], [0], [1], [0, 0, 1, 1], [], []>} : vector<16x16xf32>, vector<16x32xf32>, vector<16x32xf32> -> vector<16x32xf32>
    %126 = arith.addf %1, %125 : vector<16x32xf32>
    %cst_101 = arith.constant 0.000000e+00 : f32
    %127 = vector.broadcast %cst_101 : f32 to vector<16x16xf32>
    %c4_102 = arith.constant 4 : index
    %128 = memref.load %arg2[%c4_102] : memref<80xf32, #tpu.memory_space<smem>>
    %c0_103 = arith.constant 0 : index
    %c0_104 = arith.constant 0 : index
    %c0_105 = arith.constant 0 : index
    %c1_106 = arith.constant 1 : index
    %c2_107 = arith.constant 2 : index
    %129 = vector.load %arg3[%c0_103, %c0_104, %c0_105, %c1_106, %c2_107] : memref<1x1x5x18x18xf32, #tpu.memory_space<vmem>>, vector<1x1x1x16x16xf32>
    %130 = vector.shape_cast %129 : vector<1x1x1x16x16xf32> to vector<16x16xf32>
    %131 = vector.broadcast %128 : f32 to vector<16x16xf32>
    %132 = arith.mulf %131, %130 : vector<16x16xf32>
    %133 = arith.addf %127, %132 : vector<16x16xf32>
    %c20 = arith.constant 20 : index
    %134 = memref.load %arg2[%c20] : memref<80xf32, #tpu.memory_space<smem>>
    %c0_108 = arith.constant 0 : index
    %c0_109 = arith.constant 0 : index
    %c1_110 = arith.constant 1 : index
    %c1_111 = arith.constant 1 : index
    %c2_112 = arith.constant 2 : index
    %135 = vector.load %arg3[%c0_108, %c0_109, %c1_110, %c1_111, %c2_112] : memref<1x1x5x18x18xf32, #tpu.memory_space<vmem>>, vector<1x1x1x16x16xf32>
    %136 = vector.shape_cast %135 : vector<1x1x1x16x16xf32> to vector<16x16xf32>
    %137 = vector.broadcast %134 : f32 to vector<16x16xf32>
    %138 = arith.mulf %137, %136 : vector<16x16xf32>
    %139 = arith.addf %133, %138 : vector<16x16xf32>
    %c36 = arith.constant 36 : index
    %140 = memref.load %arg2[%c36] : memref<80xf32, #tpu.memory_space<smem>>
    %c0_113 = arith.constant 0 : index
    %c0_114 = arith.constant 0 : index
    %c2_115 = arith.constant 2 : index
    %c1_116 = arith.constant 1 : index
    %c2_117 = arith.constant 2 : index
    %141 = vector.load %arg3[%c0_113, %c0_114, %c2_115, %c1_116, %c2_117] : memref<1x1x5x18x18xf32, #tpu.memory_space<vmem>>, vector<1x1x1x16x16xf32>
    %142 = vector.shape_cast %141 : vector<1x1x1x16x16xf32> to vector<16x16xf32>
    %143 = vector.broadcast %140 : f32 to vector<16x16xf32>
    %144 = arith.mulf %143, %142 : vector<16x16xf32>
    %145 = arith.addf %139, %144 : vector<16x16xf32>
    %c52 = arith.constant 52 : index
    %146 = memref.load %arg2[%c52] : memref<80xf32, #tpu.memory_space<smem>>
    %c0_118 = arith.constant 0 : index
    %c0_119 = arith.constant 0 : index
    %c3_120 = arith.constant 3 : index
    %c1_121 = arith.constant 1 : index
    %c2_122 = arith.constant 2 : index
    %147 = vector.load %arg3[%c0_118, %c0_119, %c3_120, %c1_121, %c2_122] : memref<1x1x5x18x18xf32, #tpu.memory_space<vmem>>, vector<1x1x1x16x16xf32>
    %148 = vector.shape_cast %147 : vector<1x1x1x16x16xf32> to vector<16x16xf32>
    %149 = vector.broadcast %146 : f32 to vector<16x16xf32>
    %150 = arith.mulf %149, %148 : vector<16x16xf32>
    %151 = arith.addf %145, %150 : vector<16x16xf32>
    %c68 = arith.constant 68 : index
    %152 = memref.load %arg2[%c68] : memref<80xf32, #tpu.memory_space<smem>>
    %c0_123 = arith.constant 0 : index
    %c0_124 = arith.constant 0 : index
    %c4_125 = arith.constant 4 : index
    %c1_126 = arith.constant 1 : index
    %c2_127 = arith.constant 2 : index
    %153 = vector.load %arg3[%c0_123, %c0_124, %c4_125, %c1_126, %c2_127] : memref<1x1x5x18x18xf32, #tpu.memory_space<vmem>>, vector<1x1x1x16x16xf32>
    %154 = vector.shape_cast %153 : vector<1x1x1x16x16xf32> to vector<16x16xf32>
    %155 = vector.broadcast %152 : f32 to vector<16x16xf32>
    %156 = arith.mulf %155, %154 : vector<16x16xf32>
    %157 = arith.addf %151, %156 : vector<16x16xf32>
    %c6 = arith.constant 6 : index
    %158 = memref.load %arg2[%c6] : memref<80xf32, #tpu.memory_space<smem>>
    %159 = vector.broadcast %158 : f32 to vector<16x16xf32>
    %160 = arith.mulf %159, %5 : vector<16x16xf32>
    %161 = arith.addf %157, %160 : vector<16x16xf32>
    %c22 = arith.constant 22 : index
    %162 = memref.load %arg2[%c22] : memref<80xf32, #tpu.memory_space<smem>>
    %163 = vector.broadcast %162 : f32 to vector<16x16xf32>
    %164 = arith.mulf %163, %11 : vector<16x16xf32>
    %165 = arith.addf %161, %164 : vector<16x16xf32>
    %c38 = arith.constant 38 : index
    %166 = memref.load %arg2[%c38] : memref<80xf32, #tpu.memory_space<smem>>
    %167 = vector.broadcast %166 : f32 to vector<16x16xf32>
    %168 = arith.mulf %167, %17 : vector<16x16xf32>
    %169 = arith.addf %165, %168 : vector<16x16xf32>
    %c54 = arith.constant 54 : index
    %170 = memref.load %arg2[%c54] : memref<80xf32, #tpu.memory_space<smem>>
    %171 = vector.broadcast %170 : f32 to vector<16x16xf32>
    %172 = arith.mulf %171, %23 : vector<16x16xf32>
    %173 = arith.addf %169, %172 : vector<16x16xf32>
    %c70 = arith.constant 70 : index
    %174 = memref.load %arg2[%c70] : memref<80xf32, #tpu.memory_space<smem>>
    %175 = vector.broadcast %174 : f32 to vector<16x16xf32>
    %176 = arith.mulf %175, %29 : vector<16x16xf32>
    %177 = arith.addf %173, %176 : vector<16x16xf32>
    %c12 = arith.constant 12 : index
    %178 = memref.load %arg2[%c12] : memref<80xf32, #tpu.memory_space<smem>>
    %c0_128 = arith.constant 0 : index
    %c0_129 = arith.constant 0 : index
    %c0_130 = arith.constant 0 : index
    %c0_131 = arith.constant 0 : index
    %c2_132 = arith.constant 2 : index
    %179 = vector.load %arg3[%c0_128, %c0_129, %c0_130, %c0_131, %c2_132] : memref<1x1x5x18x18xf32, #tpu.memory_space<vmem>>, vector<1x1x1x16x16xf32>
    %180 = vector.shape_cast %179 : vector<1x1x1x16x16xf32> to vector<16x16xf32>
    %181 = vector.broadcast %178 : f32 to vector<16x16xf32>
    %182 = arith.mulf %181, %180 : vector<16x16xf32>
    %183 = arith.addf %177, %182 : vector<16x16xf32>
    %c28 = arith.constant 28 : index
    %184 = memref.load %arg2[%c28] : memref<80xf32, #tpu.memory_space<smem>>
    %c0_133 = arith.constant 0 : index
    %c0_134 = arith.constant 0 : index
    %c1_135 = arith.constant 1 : index
    %c0_136 = arith.constant 0 : index
    %c2_137 = arith.constant 2 : index
    %185 = vector.load %arg3[%c0_133, %c0_134, %c1_135, %c0_136, %c2_137] : memref<1x1x5x18x18xf32, #tpu.memory_space<vmem>>, vector<1x1x1x16x16xf32>
    %186 = vector.shape_cast %185 : vector<1x1x1x16x16xf32> to vector<16x16xf32>
    %187 = vector.broadcast %184 : f32 to vector<16x16xf32>
    %188 = arith.mulf %187, %186 : vector<16x16xf32>
    %189 = arith.addf %183, %188 : vector<16x16xf32>
    %c44 = arith.constant 44 : index
    %190 = memref.load %arg2[%c44] : memref<80xf32, #tpu.memory_space<smem>>
    %c0_138 = arith.constant 0 : index
    %c0_139 = arith.constant 0 : index
    %c2_140 = arith.constant 2 : index
    %c0_141 = arith.constant 0 : index
    %c2_142 = arith.constant 2 : index
    %191 = vector.load %arg3[%c0_138, %c0_139, %c2_140, %c0_141, %c2_142] : memref<1x1x5x18x18xf32, #tpu.memory_space<vmem>>, vector<1x1x1x16x16xf32>
    %192 = vector.shape_cast %191 : vector<1x1x1x16x16xf32> to vector<16x16xf32>
    %193 = vector.broadcast %190 : f32 to vector<16x16xf32>
    %194 = arith.mulf %193, %192 : vector<16x16xf32>
    %195 = arith.addf %189, %194 : vector<16x16xf32>
    %c60 = arith.constant 60 : index
    %196 = memref.load %arg2[%c60] : memref<80xf32, #tpu.memory_space<smem>>
    %c0_143 = arith.constant 0 : index
    %c0_144 = arith.constant 0 : index
    %c3_145 = arith.constant 3 : index
    %c0_146 = arith.constant 0 : index
    %c2_147 = arith.constant 2 : index
    %197 = vector.load %arg3[%c0_143, %c0_144, %c3_145, %c0_146, %c2_147] : memref<1x1x5x18x18xf32, #tpu.memory_space<vmem>>, vector<1x1x1x16x16xf32>
    %198 = vector.shape_cast %197 : vector<1x1x1x16x16xf32> to vector<16x16xf32>
    %199 = vector.broadcast %196 : f32 to vector<16x16xf32>
    %200 = arith.mulf %199, %198 : vector<16x16xf32>
    %201 = arith.addf %195, %200 : vector<16x16xf32>
    %c76 = arith.constant 76 : index
    %202 = memref.load %arg2[%c76] : memref<80xf32, #tpu.memory_space<smem>>
    %c0_148 = arith.constant 0 : index
    %c0_149 = arith.constant 0 : index
    %c4_150 = arith.constant 4 : index
    %c0_151 = arith.constant 0 : index
    %c2_152 = arith.constant 2 : index
    %203 = vector.load %arg3[%c0_148, %c0_149, %c4_150, %c0_151, %c2_152] : memref<1x1x5x18x18xf32, #tpu.memory_space<vmem>>, vector<1x1x1x16x16xf32>
    %204 = vector.shape_cast %203 : vector<1x1x1x16x16xf32> to vector<16x16xf32>
    %205 = vector.broadcast %202 : f32 to vector<16x16xf32>
    %206 = arith.mulf %205, %204 : vector<16x16xf32>
    %207 = arith.addf %201, %206 : vector<16x16xf32>
    %c14 = arith.constant 14 : index
    %208 = memref.load %arg2[%c14] : memref<80xf32, #tpu.memory_space<smem>>
    %209 = vector.broadcast %208 : f32 to vector<16x16xf32>
    %210 = arith.mulf %209, %65 : vector<16x16xf32>
    %211 = arith.addf %207, %210 : vector<16x16xf32>
    %c30 = arith.constant 30 : index
    %212 = memref.load %arg2[%c30] : memref<80xf32, #tpu.memory_space<smem>>
    %213 = vector.broadcast %212 : f32 to vector<16x16xf32>
    %214 = arith.mulf %213, %71 : vector<16x16xf32>
    %215 = arith.addf %211, %214 : vector<16x16xf32>
    %c46 = arith.constant 46 : index
    %216 = memref.load %arg2[%c46] : memref<80xf32, #tpu.memory_space<smem>>
    %217 = vector.broadcast %216 : f32 to vector<16x16xf32>
    %218 = arith.mulf %217, %77 : vector<16x16xf32>
    %219 = arith.addf %215, %218 : vector<16x16xf32>
    %c62 = arith.constant 62 : index
    %220 = memref.load %arg2[%c62] : memref<80xf32, #tpu.memory_space<smem>>
    %221 = vector.broadcast %220 : f32 to vector<16x16xf32>
    %222 = arith.mulf %221, %83 : vector<16x16xf32>
    %223 = arith.addf %219, %222 : vector<16x16xf32>
    %c78 = arith.constant 78 : index
    %224 = memref.load %arg2[%c78] : memref<80xf32, #tpu.memory_space<smem>>
    %225 = vector.broadcast %224 : f32 to vector<16x16xf32>
    %226 = arith.mulf %225, %89 : vector<16x16xf32>
    %227 = arith.addf %223, %226 : vector<16x16xf32>
    %c1_153 = arith.constant 1 : index
    %c0_154 = arith.constant 0 : index
    %c0_155 = arith.constant 0 : index
    %228 = vector.load %arg4[%c1_153, %c0_154, %c0_155] : memref<2x16x32xf32, #tpu.memory_space<vmem>>, vector<1x16x32xf32>
    %229 = vector.shape_cast %228 : vector<1x16x32xf32> to vector<16x32xf32>
    %cst_156 = arith.constant dense<0.000000e+00> : vector<16x32xf32>
    %230 = tpu.matmul %227, %229, %cst_156 {dimension_numbers = #tpu.dot_dimension_numbers<[1], [0], [0], [1], [0, 0, 1, 1], [], []>} : vector<16x16xf32>, vector<16x32xf32>, vector<16x32xf32> -> vector<16x32xf32>
    %231 = arith.addf %126, %230 : vector<16x32xf32>
    %c0_157 = arith.constant 0 : index
    %c0_158 = arith.constant 0 : index
    %c0_159 = arith.constant 0 : index
    %232 = vector.load %arg5[%c0_157, %c0_158, %c0_159] : memref<2x32x16xf32, #tpu.memory_space<vmem>>, vector<1x32x16xf32>
    %233 = vector.shape_cast %232 : vector<1x32x16xf32> to vector<32x16xf32>
    %cst_160 = arith.constant dense<0.000000e+00> : vector<32x32xf32>
    %234 = tpu.matmul %233, %231, %cst_160 {dimension_numbers = #tpu.dot_dimension_numbers<[1], [0], [0], [1], [0, 0, 1, 1], [], []>} : vector<32x16xf32>, vector<16x32xf32>, vector<32x32xf32> -> vector<32x32xf32>
    %235 = arith.addf %0, %234 : vector<32x32xf32>
    %cst_161 = arith.constant 0.000000e+00 : f32
    %236 = vector.broadcast %cst_161 : f32 to vector<16x32xf32>
    %cst_162 = arith.constant 0.000000e+00 : f32
    %237 = vector.broadcast %cst_162 : f32 to vector<16x16xf32>
    %c1_163 = arith.constant 1 : index
    %238 = memref.load %arg2[%c1_163] : memref<80xf32, #tpu.memory_space<smem>>
    %c0_164 = arith.constant 0 : index
    %c0_165 = arith.constant 0 : index
    %c0_166 = arith.constant 0 : index
    %c2_167 = arith.constant 2 : index
    %c1_168 = arith.constant 1 : index
    %239 = vector.load %arg3[%c0_164, %c0_165, %c0_166, %c2_167, %c1_168] : memref<1x1x5x18x18xf32, #tpu.memory_space<vmem>>, vector<1x1x1x16x16xf32>
    %240 = vector.shape_cast %239 : vector<1x1x1x16x16xf32> to vector<16x16xf32>
    %241 = vector.broadcast %238 : f32 to vector<16x16xf32>
    %242 = arith.mulf %241, %240 : vector<16x16xf32>
    %243 = arith.addf %237, %242 : vector<16x16xf32>
    %c17 = arith.constant 17 : index
    %244 = memref.load %arg2[%c17] : memref<80xf32, #tpu.memory_space<smem>>
    %c0_169 = arith.constant 0 : index
    %c0_170 = arith.constant 0 : index
    %c1_171 = arith.constant 1 : index
    %c2_172 = arith.constant 2 : index
    %c1_173 = arith.constant 1 : index
    %245 = vector.load %arg3[%c0_169, %c0_170, %c1_171, %c2_172, %c1_173] : memref<1x1x5x18x18xf32, #tpu.memory_space<vmem>>, vector<1x1x1x16x16xf32>
    %246 = vector.shape_cast %245 : vector<1x1x1x16x16xf32> to vector<16x16xf32>
    %247 = vector.broadcast %244 : f32 to vector<16x16xf32>
    %248 = arith.mulf %247, %246 : vector<16x16xf32>
    %249 = arith.addf %243, %248 : vector<16x16xf32>
    %c33 = arith.constant 33 : index
    %250 = memref.load %arg2[%c33] : memref<80xf32, #tpu.memory_space<smem>>
    %c0_174 = arith.constant 0 : index
    %c0_175 = arith.constant 0 : index
    %c2_176 = arith.constant 2 : index
    %c2_177 = arith.constant 2 : index
    %c1_178 = arith.constant 1 : index
    %251 = vector.load %arg3[%c0_174, %c0_175, %c2_176, %c2_177, %c1_178] : memref<1x1x5x18x18xf32, #tpu.memory_space<vmem>>, vector<1x1x1x16x16xf32>
    %252 = vector.shape_cast %251 : vector<1x1x1x16x16xf32> to vector<16x16xf32>
    %253 = vector.broadcast %250 : f32 to vector<16x16xf32>
    %254 = arith.mulf %253, %252 : vector<16x16xf32>
    %255 = arith.addf %249, %254 : vector<16x16xf32>
    %c49 = arith.constant 49 : index
    %256 = memref.load %arg2[%c49] : memref<80xf32, #tpu.memory_space<smem>>
    %c0_179 = arith.constant 0 : index
    %c0_180 = arith.constant 0 : index
    %c3_181 = arith.constant 3 : index
    %c2_182 = arith.constant 2 : index
    %c1_183 = arith.constant 1 : index
    %257 = vector.load %arg3[%c0_179, %c0_180, %c3_181, %c2_182, %c1_183] : memref<1x1x5x18x18xf32, #tpu.memory_space<vmem>>, vector<1x1x1x16x16xf32>
    %258 = vector.shape_cast %257 : vector<1x1x1x16x16xf32> to vector<16x16xf32>
    %259 = vector.broadcast %256 : f32 to vector<16x16xf32>
    %260 = arith.mulf %259, %258 : vector<16x16xf32>
    %261 = arith.addf %255, %260 : vector<16x16xf32>
    %c65 = arith.constant 65 : index
    %262 = memref.load %arg2[%c65] : memref<80xf32, #tpu.memory_space<smem>>
    %c0_184 = arith.constant 0 : index
    %c0_185 = arith.constant 0 : index
    %c4_186 = arith.constant 4 : index
    %c2_187 = arith.constant 2 : index
    %c1_188 = arith.constant 1 : index
    %263 = vector.load %arg3[%c0_184, %c0_185, %c4_186, %c2_187, %c1_188] : memref<1x1x5x18x18xf32, #tpu.memory_space<vmem>>, vector<1x1x1x16x16xf32>
    %264 = vector.shape_cast %263 : vector<1x1x1x16x16xf32> to vector<16x16xf32>
    %265 = vector.broadcast %262 : f32 to vector<16x16xf32>
    %266 = arith.mulf %265, %264 : vector<16x16xf32>
    %267 = arith.addf %261, %266 : vector<16x16xf32>
    %c3_189 = arith.constant 3 : index
    %268 = memref.load %arg2[%c3_189] : memref<80xf32, #tpu.memory_space<smem>>
    %c0_190 = arith.constant 0 : index
    %c0_191 = arith.constant 0 : index
    %c0_192 = arith.constant 0 : index
    %c2_193 = arith.constant 2 : index
    %c0_194 = arith.constant 0 : index
    %269 = vector.load %arg3[%c0_190, %c0_191, %c0_192, %c2_193, %c0_194] : memref<1x1x5x18x18xf32, #tpu.memory_space<vmem>>, vector<1x1x1x16x16xf32>
    %270 = vector.shape_cast %269 : vector<1x1x1x16x16xf32> to vector<16x16xf32>
    %271 = vector.broadcast %268 : f32 to vector<16x16xf32>
    %272 = arith.mulf %271, %270 : vector<16x16xf32>
    %273 = arith.addf %267, %272 : vector<16x16xf32>
    %c19 = arith.constant 19 : index
    %274 = memref.load %arg2[%c19] : memref<80xf32, #tpu.memory_space<smem>>
    %c0_195 = arith.constant 0 : index
    %c0_196 = arith.constant 0 : index
    %c1_197 = arith.constant 1 : index
    %c2_198 = arith.constant 2 : index
    %c0_199 = arith.constant 0 : index
    %275 = vector.load %arg3[%c0_195, %c0_196, %c1_197, %c2_198, %c0_199] : memref<1x1x5x18x18xf32, #tpu.memory_space<vmem>>, vector<1x1x1x16x16xf32>
    %276 = vector.shape_cast %275 : vector<1x1x1x16x16xf32> to vector<16x16xf32>
    %277 = vector.broadcast %274 : f32 to vector<16x16xf32>
    %278 = arith.mulf %277, %276 : vector<16x16xf32>
    %279 = arith.addf %273, %278 : vector<16x16xf32>
    %c35 = arith.constant 35 : index
    %280 = memref.load %arg2[%c35] : memref<80xf32, #tpu.memory_space<smem>>
    %c0_200 = arith.constant 0 : index
    %c0_201 = arith.constant 0 : index
    %c2_202 = arith.constant 2 : index
    %c2_203 = arith.constant 2 : index
    %c0_204 = arith.constant 0 : index
    %281 = vector.load %arg3[%c0_200, %c0_201, %c2_202, %c2_203, %c0_204] : memref<1x1x5x18x18xf32, #tpu.memory_space<vmem>>, vector<1x1x1x16x16xf32>
    %282 = vector.shape_cast %281 : vector<1x1x1x16x16xf32> to vector<16x16xf32>
    %283 = vector.broadcast %280 : f32 to vector<16x16xf32>
    %284 = arith.mulf %283, %282 : vector<16x16xf32>
    %285 = arith.addf %279, %284 : vector<16x16xf32>
    %c51 = arith.constant 51 : index
    %286 = memref.load %arg2[%c51] : memref<80xf32, #tpu.memory_space<smem>>
    %c0_205 = arith.constant 0 : index
    %c0_206 = arith.constant 0 : index
    %c3_207 = arith.constant 3 : index
    %c2_208 = arith.constant 2 : index
    %c0_209 = arith.constant 0 : index
    %287 = vector.load %arg3[%c0_205, %c0_206, %c3_207, %c2_208, %c0_209] : memref<1x1x5x18x18xf32, #tpu.memory_space<vmem>>, vector<1x1x1x16x16xf32>
    %288 = vector.shape_cast %287 : vector<1x1x1x16x16xf32> to vector<16x16xf32>
    %289 = vector.broadcast %286 : f32 to vector<16x16xf32>
    %290 = arith.mulf %289, %288 : vector<16x16xf32>
    %291 = arith.addf %285, %290 : vector<16x16xf32>
    %c67 = arith.constant 67 : index
    %292 = memref.load %arg2[%c67] : memref<80xf32, #tpu.memory_space<smem>>
    %c0_210 = arith.constant 0 : index
    %c0_211 = arith.constant 0 : index
    %c4_212 = arith.constant 4 : index
    %c2_213 = arith.constant 2 : index
    %c0_214 = arith.constant 0 : index
    %293 = vector.load %arg3[%c0_210, %c0_211, %c4_212, %c2_213, %c0_214] : memref<1x1x5x18x18xf32, #tpu.memory_space<vmem>>, vector<1x1x1x16x16xf32>
    %294 = vector.shape_cast %293 : vector<1x1x1x16x16xf32> to vector<16x16xf32>
    %295 = vector.broadcast %292 : f32 to vector<16x16xf32>
    %296 = arith.mulf %295, %294 : vector<16x16xf32>
    %297 = arith.addf %291, %296 : vector<16x16xf32>
    %c9 = arith.constant 9 : index
    %298 = memref.load %arg2[%c9] : memref<80xf32, #tpu.memory_space<smem>>
    %299 = vector.broadcast %298 : f32 to vector<16x16xf32>
    %300 = arith.mulf %299, %5 : vector<16x16xf32>
    %301 = arith.addf %297, %300 : vector<16x16xf32>
    %c25 = arith.constant 25 : index
    %302 = memref.load %arg2[%c25] : memref<80xf32, #tpu.memory_space<smem>>
    %303 = vector.broadcast %302 : f32 to vector<16x16xf32>
    %304 = arith.mulf %303, %11 : vector<16x16xf32>
    %305 = arith.addf %301, %304 : vector<16x16xf32>
    %c41 = arith.constant 41 : index
    %306 = memref.load %arg2[%c41] : memref<80xf32, #tpu.memory_space<smem>>
    %307 = vector.broadcast %306 : f32 to vector<16x16xf32>
    %308 = arith.mulf %307, %17 : vector<16x16xf32>
    %309 = arith.addf %305, %308 : vector<16x16xf32>
    %c57 = arith.constant 57 : index
    %310 = memref.load %arg2[%c57] : memref<80xf32, #tpu.memory_space<smem>>
    %311 = vector.broadcast %310 : f32 to vector<16x16xf32>
    %312 = arith.mulf %311, %23 : vector<16x16xf32>
    %313 = arith.addf %309, %312 : vector<16x16xf32>
    %c73 = arith.constant 73 : index
    %314 = memref.load %arg2[%c73] : memref<80xf32, #tpu.memory_space<smem>>
    %315 = vector.broadcast %314 : f32 to vector<16x16xf32>
    %316 = arith.mulf %315, %29 : vector<16x16xf32>
    %317 = arith.addf %313, %316 : vector<16x16xf32>
    %c11 = arith.constant 11 : index
    %318 = memref.load %arg2[%c11] : memref<80xf32, #tpu.memory_space<smem>>
    %319 = vector.broadcast %318 : f32 to vector<16x16xf32>
    %320 = arith.mulf %319, %35 : vector<16x16xf32>
    %321 = arith.addf %317, %320 : vector<16x16xf32>
    %c27 = arith.constant 27 : index
    %322 = memref.load %arg2[%c27] : memref<80xf32, #tpu.memory_space<smem>>
    %323 = vector.broadcast %322 : f32 to vector<16x16xf32>
    %324 = arith.mulf %323, %41 : vector<16x16xf32>
    %325 = arith.addf %321, %324 : vector<16x16xf32>
    %c43 = arith.constant 43 : index
    %326 = memref.load %arg2[%c43] : memref<80xf32, #tpu.memory_space<smem>>
    %327 = vector.broadcast %326 : f32 to vector<16x16xf32>
    %328 = arith.mulf %327, %47 : vector<16x16xf32>
    %329 = arith.addf %325, %328 : vector<16x16xf32>
    %c59 = arith.constant 59 : index
    %330 = memref.load %arg2[%c59] : memref<80xf32, #tpu.memory_space<smem>>
    %331 = vector.broadcast %330 : f32 to vector<16x16xf32>
    %332 = arith.mulf %331, %53 : vector<16x16xf32>
    %333 = arith.addf %329, %332 : vector<16x16xf32>
    %c75 = arith.constant 75 : index
    %334 = memref.load %arg2[%c75] : memref<80xf32, #tpu.memory_space<smem>>
    %335 = vector.broadcast %334 : f32 to vector<16x16xf32>
    %336 = arith.mulf %335, %59 : vector<16x16xf32>
    %337 = arith.addf %333, %336 : vector<16x16xf32>
    %c0_215 = arith.constant 0 : index
    %c0_216 = arith.constant 0 : index
    %c0_217 = arith.constant 0 : index
    %338 = vector.load %arg4[%c0_215, %c0_216, %c0_217] : memref<2x16x32xf32, #tpu.memory_space<vmem>>, vector<1x16x32xf32>
    %339 = vector.shape_cast %338 : vector<1x16x32xf32> to vector<16x32xf32>
    %cst_218 = arith.constant dense<0.000000e+00> : vector<16x32xf32>
    %340 = tpu.matmul %337, %339, %cst_218 {dimension_numbers = #tpu.dot_dimension_numbers<[1], [0], [0], [1], [0, 0, 1, 1], [], []>} : vector<16x16xf32>, vector<16x32xf32>, vector<16x32xf32> -> vector<16x32xf32>
    %341 = arith.addf %236, %340 : vector<16x32xf32>
    %cst_219 = arith.constant 0.000000e+00 : f32
    %342 = vector.broadcast %cst_219 : f32 to vector<16x16xf32>
    %c0_220 = arith.constant 0 : index
    %343 = memref.load %arg2[%c0_220] : memref<80xf32, #tpu.memory_space<smem>>
    %c0_221 = arith.constant 0 : index
    %c0_222 = arith.constant 0 : index
    %c0_223 = arith.constant 0 : index
    %c2_224 = arith.constant 2 : index
    %c2_225 = arith.constant 2 : index
    %344 = vector.load %arg3[%c0_221, %c0_222, %c0_223, %c2_224, %c2_225] : memref<1x1x5x18x18xf32, #tpu.memory_space<vmem>>, vector<1x1x1x16x16xf32>
    %345 = vector.shape_cast %344 : vector<1x1x1x16x16xf32> to vector<16x16xf32>
    %346 = vector.broadcast %343 : f32 to vector<16x16xf32>
    %347 = arith.mulf %346, %345 : vector<16x16xf32>
    %348 = arith.addf %342, %347 : vector<16x16xf32>
    %c16 = arith.constant 16 : index
    %349 = memref.load %arg2[%c16] : memref<80xf32, #tpu.memory_space<smem>>
    %c0_226 = arith.constant 0 : index
    %c0_227 = arith.constant 0 : index
    %c1_228 = arith.constant 1 : index
    %c2_229 = arith.constant 2 : index
    %c2_230 = arith.constant 2 : index
    %350 = vector.load %arg3[%c0_226, %c0_227, %c1_228, %c2_229, %c2_230] : memref<1x1x5x18x18xf32, #tpu.memory_space<vmem>>, vector<1x1x1x16x16xf32>
    %351 = vector.shape_cast %350 : vector<1x1x1x16x16xf32> to vector<16x16xf32>
    %352 = vector.broadcast %349 : f32 to vector<16x16xf32>
    %353 = arith.mulf %352, %351 : vector<16x16xf32>
    %354 = arith.addf %348, %353 : vector<16x16xf32>
    %c32 = arith.constant 32 : index
    %355 = memref.load %arg2[%c32] : memref<80xf32, #tpu.memory_space<smem>>
    %c0_231 = arith.constant 0 : index
    %c0_232 = arith.constant 0 : index
    %c2_233 = arith.constant 2 : index
    %c2_234 = arith.constant 2 : index
    %c2_235 = arith.constant 2 : index
    %356 = vector.load %arg3[%c0_231, %c0_232, %c2_233, %c2_234, %c2_235] : memref<1x1x5x18x18xf32, #tpu.memory_space<vmem>>, vector<1x1x1x16x16xf32>
    %357 = vector.shape_cast %356 : vector<1x1x1x16x16xf32> to vector<16x16xf32>
    %358 = vector.broadcast %355 : f32 to vector<16x16xf32>
    %359 = arith.mulf %358, %357 : vector<16x16xf32>
    %360 = arith.addf %354, %359 : vector<16x16xf32>
    %c48 = arith.constant 48 : index
    %361 = memref.load %arg2[%c48] : memref<80xf32, #tpu.memory_space<smem>>
    %c0_236 = arith.constant 0 : index
    %c0_237 = arith.constant 0 : index
    %c3_238 = arith.constant 3 : index
    %c2_239 = arith.constant 2 : index
    %c2_240 = arith.constant 2 : index
    %362 = vector.load %arg3[%c0_236, %c0_237, %c3_238, %c2_239, %c2_240] : memref<1x1x5x18x18xf32, #tpu.memory_space<vmem>>, vector<1x1x1x16x16xf32>
    %363 = vector.shape_cast %362 : vector<1x1x1x16x16xf32> to vector<16x16xf32>
    %364 = vector.broadcast %361 : f32 to vector<16x16xf32>
    %365 = arith.mulf %364, %363 : vector<16x16xf32>
    %366 = arith.addf %360, %365 : vector<16x16xf32>
    %c64 = arith.constant 64 : index
    %367 = memref.load %arg2[%c64] : memref<80xf32, #tpu.memory_space<smem>>
    %c0_241 = arith.constant 0 : index
    %c0_242 = arith.constant 0 : index
    %c4_243 = arith.constant 4 : index
    %c2_244 = arith.constant 2 : index
    %c2_245 = arith.constant 2 : index
    %368 = vector.load %arg3[%c0_241, %c0_242, %c4_243, %c2_244, %c2_245] : memref<1x1x5x18x18xf32, #tpu.memory_space<vmem>>, vector<1x1x1x16x16xf32>
    %369 = vector.shape_cast %368 : vector<1x1x1x16x16xf32> to vector<16x16xf32>
    %370 = vector.broadcast %367 : f32 to vector<16x16xf32>
    %371 = arith.mulf %370, %369 : vector<16x16xf32>
    %372 = arith.addf %366, %371 : vector<16x16xf32>
    %c2_246 = arith.constant 2 : index
    %373 = memref.load %arg2[%c2_246] : memref<80xf32, #tpu.memory_space<smem>>
    %374 = vector.broadcast %373 : f32 to vector<16x16xf32>
    %375 = arith.mulf %374, %240 : vector<16x16xf32>
    %376 = arith.addf %372, %375 : vector<16x16xf32>
    %c18 = arith.constant 18 : index
    %377 = memref.load %arg2[%c18] : memref<80xf32, #tpu.memory_space<smem>>
    %378 = vector.broadcast %377 : f32 to vector<16x16xf32>
    %379 = arith.mulf %378, %246 : vector<16x16xf32>
    %380 = arith.addf %376, %379 : vector<16x16xf32>
    %c34 = arith.constant 34 : index
    %381 = memref.load %arg2[%c34] : memref<80xf32, #tpu.memory_space<smem>>
    %382 = vector.broadcast %381 : f32 to vector<16x16xf32>
    %383 = arith.mulf %382, %252 : vector<16x16xf32>
    %384 = arith.addf %380, %383 : vector<16x16xf32>
    %c50 = arith.constant 50 : index
    %385 = memref.load %arg2[%c50] : memref<80xf32, #tpu.memory_space<smem>>
    %386 = vector.broadcast %385 : f32 to vector<16x16xf32>
    %387 = arith.mulf %386, %258 : vector<16x16xf32>
    %388 = arith.addf %384, %387 : vector<16x16xf32>
    %c66 = arith.constant 66 : index
    %389 = memref.load %arg2[%c66] : memref<80xf32, #tpu.memory_space<smem>>
    %390 = vector.broadcast %389 : f32 to vector<16x16xf32>
    %391 = arith.mulf %390, %264 : vector<16x16xf32>
    %392 = arith.addf %388, %391 : vector<16x16xf32>
    %c8 = arith.constant 8 : index
    %393 = memref.load %arg2[%c8] : memref<80xf32, #tpu.memory_space<smem>>
    %394 = vector.broadcast %393 : f32 to vector<16x16xf32>
    %395 = arith.mulf %394, %130 : vector<16x16xf32>
    %396 = arith.addf %392, %395 : vector<16x16xf32>
    %c24 = arith.constant 24 : index
    %397 = memref.load %arg2[%c24] : memref<80xf32, #tpu.memory_space<smem>>
    %398 = vector.broadcast %397 : f32 to vector<16x16xf32>
    %399 = arith.mulf %398, %136 : vector<16x16xf32>
    %400 = arith.addf %396, %399 : vector<16x16xf32>
    %c40 = arith.constant 40 : index
    %401 = memref.load %arg2[%c40] : memref<80xf32, #tpu.memory_space<smem>>
    %402 = vector.broadcast %401 : f32 to vector<16x16xf32>
    %403 = arith.mulf %402, %142 : vector<16x16xf32>
    %404 = arith.addf %400, %403 : vector<16x16xf32>
    %c56 = arith.constant 56 : index
    %405 = memref.load %arg2[%c56] : memref<80xf32, #tpu.memory_space<smem>>
    %406 = vector.broadcast %405 : f32 to vector<16x16xf32>
    %407 = arith.mulf %406, %148 : vector<16x16xf32>
    %408 = arith.addf %404, %407 : vector<16x16xf32>
    %c72 = arith.constant 72 : index
    %409 = memref.load %arg2[%c72] : memref<80xf32, #tpu.memory_space<smem>>
    %410 = vector.broadcast %409 : f32 to vector<16x16xf32>
    %411 = arith.mulf %410, %154 : vector<16x16xf32>
    %412 = arith.addf %408, %411 : vector<16x16xf32>
    %c10 = arith.constant 10 : index
    %413 = memref.load %arg2[%c10] : memref<80xf32, #tpu.memory_space<smem>>
    %414 = vector.broadcast %413 : f32 to vector<16x16xf32>
    %415 = arith.mulf %414, %5 : vector<16x16xf32>
    %416 = arith.addf %412, %415 : vector<16x16xf32>
    %c26 = arith.constant 26 : index
    %417 = memref.load %arg2[%c26] : memref<80xf32, #tpu.memory_space<smem>>
    %418 = vector.broadcast %417 : f32 to vector<16x16xf32>
    %419 = arith.mulf %418, %11 : vector<16x16xf32>
    %420 = arith.addf %416, %419 : vector<16x16xf32>
    %c42 = arith.constant 42 : index
    %421 = memref.load %arg2[%c42] : memref<80xf32, #tpu.memory_space<smem>>
    %422 = vector.broadcast %421 : f32 to vector<16x16xf32>
    %423 = arith.mulf %422, %17 : vector<16x16xf32>
    %424 = arith.addf %420, %423 : vector<16x16xf32>
    %c58 = arith.constant 58 : index
    %425 = memref.load %arg2[%c58] : memref<80xf32, #tpu.memory_space<smem>>
    %426 = vector.broadcast %425 : f32 to vector<16x16xf32>
    %427 = arith.mulf %426, %23 : vector<16x16xf32>
    %428 = arith.addf %424, %427 : vector<16x16xf32>
    %c74 = arith.constant 74 : index
    %429 = memref.load %arg2[%c74] : memref<80xf32, #tpu.memory_space<smem>>
    %430 = vector.broadcast %429 : f32 to vector<16x16xf32>
    %431 = arith.mulf %430, %29 : vector<16x16xf32>
    %432 = arith.addf %428, %431 : vector<16x16xf32>
    %c1_247 = arith.constant 1 : index
    %c0_248 = arith.constant 0 : index
    %c0_249 = arith.constant 0 : index
    %433 = vector.load %arg4[%c1_247, %c0_248, %c0_249] : memref<2x16x32xf32, #tpu.memory_space<vmem>>, vector<1x16x32xf32>
    %434 = vector.shape_cast %433 : vector<1x16x32xf32> to vector<16x32xf32>
    %cst_250 = arith.constant dense<0.000000e+00> : vector<16x32xf32>
    %435 = tpu.matmul %432, %434, %cst_250 {dimension_numbers = #tpu.dot_dimension_numbers<[1], [0], [0], [1], [0, 0, 1, 1], [], []>} : vector<16x16xf32>, vector<16x32xf32>, vector<16x32xf32> -> vector<16x32xf32>
    %436 = arith.addf %341, %435 : vector<16x32xf32>
    %c1_251 = arith.constant 1 : index
    %c0_252 = arith.constant 0 : index
    %c0_253 = arith.constant 0 : index
    %437 = vector.load %arg5[%c1_251, %c0_252, %c0_253] : memref<2x32x16xf32, #tpu.memory_space<vmem>>, vector<1x32x16xf32>
    %438 = vector.shape_cast %437 : vector<1x32x16xf32> to vector<32x16xf32>
    %cst_254 = arith.constant dense<0.000000e+00> : vector<32x32xf32>
    %439 = tpu.matmul %438, %436, %cst_254 {dimension_numbers = #tpu.dot_dimension_numbers<[1], [0], [0], [1], [0, 0, 1, 1], [], []>} : vector<32x16xf32>, vector<16x32xf32>, vector<32x32xf32> -> vector<32x32xf32>
    %440 = arith.addf %235, %439 : vector<32x32xf32>
    %c0_255 = arith.constant 0 : index
    %c0_256 = arith.constant 0 : index
    %c0_257 = arith.constant 0 : index
    %c0_258 = arith.constant 0 : index
    %441 = vector.load %arg6[%c0_255, %c0_256, %c0_257, %c0_258] : memref<1x1x32x32xf32, #tpu.memory_space<vmem>>, vector<1x1x32x32xf32>
    %442 = vector.shape_cast %441 : vector<1x1x32x32xf32> to vector<32x32xf32>
    %443 = vector.shape_cast %440 : vector<32x32xf32> to vector<1x1x32x32xf32>
    tpu.vector_store %arg6[%c0_255, %c0_256, %c0_257, %c0_258], %443 {strides = array<i32>} : memref<1x1x32x32xf32, #tpu.memory_space<vmem>>, vector<1x1x32x32xf32>,
    return
  }
  func.func @transform_0(%arg0: i32, %arg1: i32) -> i32 {
    %c0_i32 = arith.constant 0 : i32
    %c0_i32_0 = arith.constant 0 : i32
    return %c0_i32 : i32
  }
  func.func @transform_1(%arg0: i32, %arg1: i32) -> (i32, i32, i32, i32, i32) {
    %c0_i32 = arith.constant 0 : i32
    %c0_i32_0 = arith.constant 0 : i32
    %c0_i32_1 = arith.constant 0 : i32
    %c0_i32_2 = arith.constant 0 : i32
    return %arg0, %arg1, %c0_i32, %c0_i32_0, %c0_i32_1 : i32, i32, i32, i32, i32
  }
  func.func @transform_2(%arg0: i32, %arg1: i32) -> (i32, i32, i32) {
    %c0_i32 = arith.constant 0 : i32
    %c0_i32_0 = arith.constant 0 : i32
    %c0_i32_1 = arith.constant 0 : i32
    %c0_i32_2 = arith.constant 0 : i32
    return %c0_i32, %c0_i32_0, %c0_i32_1 : i32, i32, i32
  }
  func.func @transform_3(%arg0: i32, %arg1: i32) -> (i32, i32, i32) {
    %c0_i32 = arith.constant 0 : i32
    %c0_i32_0 = arith.constant 0 : i32
    %c0_i32_1 = arith.constant 0 : i32
    %c0_i32_2 = arith.constant 0 : i32
    return %c0_i32, %c0_i32_0, %c0_i32_1 : i32, i32, i32
  }
  func.func @transform_4(%arg0: i32, %arg1: i32) -> (i32, i32, i32, i32) {
    %c0_i32 = arith.constant 0 : i32
    %c0_i32_0 = arith.constant 0 : i32
    %c0_i32_1 = arith.constant 0 : i32
    return %arg0, %c0_i32, %arg1, %c0_i32_0 : i32, i32, i32, i32
  }
}

</mosaic_0001>

<bundles_post_ra>
// kernel: sidebranch_forward.1
= control target key start
LH: loop header
LB: loop body
LE: loop exit
PB: predicated region body
PF: predicated region fallthrough
CT: control target
= control target key end

     0   :  { %s2800_s0 = inlined_call_operand.vmem [shape: f32[80], index: 0, kind: input, shape index: {}]   ;;  %s2801_s1 = inlined_call_operand.vmem [shape: f32[2,1,5,18,18], index: 1, kind: input, shape index: {}]   ;;  %s2802_s2 = inlined_call_operand.vmem [shape: f32[2,16,32], index: 2, kind: input, shape index: {}]   ;;  %s2803_s3 = inlined_call_operand.vmem [shape: f32[2,32,16], index: 3, kind: input, shape index: {}]   ;;  %s2804_s4 = inlined_call_operand.hbm [shape: f32[2,1,32,32], index: 4, kind: output, shape index: {}]  }
   0x1   :  { %2824 = sst [smem:[#allocation18_spill]] %s2800_s0 }
   0x2   :  { %2825 = sst [smem:[#allocation19_spill]] %s2801_s1 }
   0x3   :  { %2826 = sst [smem:[#allocation20_spill]] %s2804_s4 }
   0x4   :  { %9 = vsyncpa [#allocation4], 0 }
   0x5   :  { %10 = vsyncpa [#allocation3], 0 }
   0x6   :  { %12 = vsyncpa [#allocation3 + $0x1], 0  ;;  %s1771_s15 = smov 0   ;;  %s1773_s16 = smov 0  }
   0x7   :  { %s1775_s17 = smov 0   ;;  %s1777_s18 = smov 0  }
   0x8   :  { %s1779_s19 = smov 0   ;;  %s1781_s20 = smov 0  }
   0x9 LB: > { %2827 = sst [smem:[#allocation8_spill]] %s1718_s15  ;;  %s1419_s21 = sadd.s32 4294967295, %s1738_s20   ;;  %s1738_s20 = sphi %s1781_s20, %s18_s20   ;;  %s1734_s19 = sphi %s1779_s19, %s2858_s19   ;;  %s1730_s18 = sphi %s1777_s18, %s2857_s18   ;;  %s1726_s17 = sphi %s1775_s17, %s2856_s17   ;;  %s1722_s16 = sphi %s1773_s16, %s2855_s16   ;;  %s1718_s15 = sphi %s1771_s15, %s2854_s15  }
   0xa   : > { %2828 = sst [smem:[#allocation9_spill]] %s1722_s16  ;;  %s1420_s22 = sadd.s32 4294967294, %s1738_s20  }
   0xb   : > { %2829 = sst [smem:[#allocation10_spill]] %s1726_s17  ;;  %s30_s23 = sadd.s32 1, %s1734_s19 }
   0xc   : > { %2830 = sst [smem:[#allocation11_spill]] %s1730_s18  ;;  %s130_s24 = sadd.s32 1, %s1726_s17 }
   0xd   : > { %2831 = sst [smem:[#allocation12_spill]] %s1734_s19  ;;  %p32_p0 = scmp.ge.s32.totalorder %s30_s23, 2 }
   0xe   : > { %2832 = sst [smem:[#allocation13_spill]] %s1738_s20  ;;  %p140_p1 = scmp.ne.s32.totalorder %s1726_s17, %s1722_s16 }
   0xf   : > { %p141_p2 = scmp.eq.s32.totalorder %s1419_s21, 1  ;;  %p146_p3 = scmp.ne.s32.totalorder %s1722_s16, %s1718_s15 }
  0x10   : > { %s2860_s23 = smov (%p32_p0, %s30_s23), 0  ;;  %p147_p5 = scmp.eq.s32.totalorder %s1420_s22, 1 }
  0x11   : > { %2833 = sst [smem:[#allocation14_spill]] %s2860_s23  ;;  %p1811_p4 = por %p141_p2, %p140_p1 }
  0x12   : > { %s125_s26 = ssub.s32 %s1734_s19, %s2860_s23  ;;  %p1421_p6 = scmp.ge.s32.totalorder %s1738_s20, 1 }
  0x13   : > { %s2834_s25 = scalar_select %p1811_p4, 1, 0 }
  0x14   : > { %p128_p7 = scmp.eq.s32.totalorder %s125_s26, 0  ;;  %p1818_p8 = por %p147_p5, %p146_p3 }
  0x15   : > { %2835 = sst [smem:[#allocation15_spill]] %s2834_s25  ;;  %p154_p9 = scmp.lt.s32.totalorder %s1738_s20, 3 }
  0x16   : > { %s2836_s27 = scalar_select %p1818_p8, 1, 0 }
  0x17   : > { %s1824_s28 = scalar_select %p128_p7, %s1726_s17, %s130_s24  }
  0x18   : > { %2837 = sst [smem:[#allocation16_spill]] %s2836_s27  ;;  %p155_p10 = pnand %p1421_p6, %p154_p9 }
  0x19   : > { %2838 = sst [smem:[#allocation17_spill]] %s1824_s28  ;;  %p1574_p11 = scmp.eq.s32.totalorder %s1419_s21, 0 }
  0x1a   : > { %s2839_s0 = sld [smem:[#allocation18_spill]]  ;;  %p1566_p12 = pneg %p155_p10 }
  0x1b   : > { %s1740_s6 = smov [#allocation2]  }
  0x1c   : > { %p1567_p13 = pnand %p1574_p11, %p1566_p12 }
  0x1d   : > { %197 = sbr.rel (%p155_p10) target bundleno = 786 (0x312), region = 36 }
  0x20   : > { %s166_s5 = sshll.u32 %s2839_s0, 4  ;;  %s167_s5 = int_to_ptr.vmem [resolvable:$true] %s166_s5 }
  0x21   : > { %1569 = dma.vmem_to_smem (!%p1567_p13), %s167_s5, 16, %s1740_s6, [#allocation4]  }
  0x22   : > { %1709 = dma.done.wait (%p1574_p11), [#allocation4], 16  }
  0x23   : > { %1711 = vsyncadd (%p1574_p11), [#allocation4], 4294967280 }
  0x24   : > { %204 = sfence }
  0x25   : > { %p229_p0 = scmp.lt.s32.totalorder %s1730_s18, 1  ;;  %s1830_s7 = sld [smem:[#allocation2 + $0x27]]  ;;  %vm674_vm0 = vcmask 130048   ;;  %vm1302_vm1 = vcmask 261120  }
  0x26   : > { %s1833_s9 = sld [smem:[#allocation2 + $0x17]]  ;;  %s2807_s26 = smov 1  }
  0x27   : > { %s230_s8 = scalar_select %p229_p0, %s1730_s18, 1 }
  0x28   : > { %s1835_s11 = sld [smem:[#allocation2 + $0x7]]  ;;  %s2841_s28 = smov 1  }
  0x29   : > { %s1559_s10 = smul.u32 120, %s230_s8  ;;  %s1837_s12 = sld [smem:[#allocation2 + $0x26]] }
  0x2a   : > { %s2840_s1 = sld [smem:[#allocation19_spill]] }
  0x2b   : > { %s1844_s22 = sld [smem:[#allocation2 + $0x16]]  ;;  %v312_v1 = vstv %s1830_s7 }
  0x2c   : > { %s1853_s24 = sld [smem:[#allocation2 + $0x6]]  ;;  %v298_v5 = vstv %s1833_s9 }
  0x2d   : > { %s1868_s29 = sld [smem:[#allocation2 + $0x36]] }
  0x2e   : > { %v284_v7 = vstv %s1835_s11  ;;  %s1872_s30 = sld [smem:[#allocation2 + $0x37]] }
  0x2f   : > { %v524_v9 = vstv %s1837_s12  ;;  %s1880_s5 = sld [smem:[#allocation2 + $0x46]] }
  0x30   : > { %s1842_s21 = scalar_lea.vmem %s2840_s1, %s1559_s10  ;;  %s1890_s6 = sld [smem:[#allocation2 + $0x47]] }
  0x31   : > { %v1847_v0 = vld [vmem:[%s1842_s21 + $0x31] sm:$0xff]  ;;  %v1851_v2 = vld [vmem:[%s1842_s21 + $0x19] sm:$0xff]  ;;  %v1857_v4 = vld [vmem:[%s1842_s21 + $0x1] sm:$0xff]  ;;  %v510_v10 = vstv %s1844_s22  ;;  %s1921_s7 = sld [smem:[#allocation2 + $0x3]] }
  0x32   : > { %v313_v3 = vmul.f32 %v1847_v0, %v312_v1  ;;  %v299_v6 = vmul.f32 %v1851_v2, %v298_v5  ;;  %v285_v8 = vmul.f32 %v284_v7, %v1857_v4  ;;  %v525_v11 = vmul.f32 %v1847_v0, %v524_v9  ;;  %v1878_v15 = vld [vmem:[%s1842_s21 + $0x9] sm:$0xff]  ;;  %v1896_v22 = vld [vmem:[%s1842_s21 + $0x61] sm:$0xff]  ;;  %v1907_v28 = vld [vmem:[%s1842_s21 + $0x39] sm:$0xff]  ;;  %s1933_s8 = sld [smem:[#allocation2 + $0x12]] }
  0x33   : > { %v496_v12 = vstv %s1853_s24  ;;  %v511_v13 = vmul.f32 %v1851_v2, %v510_v10  ;;  %v1885_v16 = vld [vmem:[%s1842_s21 + $0x49] sm:$0xff]  ;;  %v538_v17 = vstv %s1868_s29  ;;  %v286_v18 = vmul.f32 %v284_v7, %v1878_v15  ;;  %v1911_v29 = vld [vmem:[%s1842_s21 + $0x21] sm:$0xff]  ;;  %s1940_s9 = sld [smem:[#allocation2 + $0x13]] }
  0x34   : > { %317 = vrot.lane.b32.xlu2 %v313_v3, %s2807_s26  ;;  %303 = vrot.lane.b32.xlu1 %v299_v6, %s2807_s26  ;;  %v497_v14 = vmul.f32 %v496_v12, %v1857_v4  ;;  %v326_v19 = vstv %s1872_s30  ;;  %v539_v20 = vmul.f32 %v1885_v16, %v538_v17  ;;  %v498_v26 = vmul.f32 %v496_v12, %v1878_v15  ;;  %v1919_v33 = vld [vmem:[%s1842_s21 + $0x51] sm:$0xff]  ;;  %s1945_s10 = sld [smem:[#allocation2 + $0x2]] }
  0x35   : > { %289 = vrot.lane.b32.xlu0 %v285_v8, %s2807_s26  ;;  %v327_v21 = vmul.f32 %v1885_v16, %v326_v19  ;;  %v552_v23 = vstv %s1880_s5  ;;  %v314_v30 = vmul.f32 %v1907_v28, %v312_v1  ;;  %v512_v31 = vmul.f32 %v1911_v29, %v510_v10  ;;  %v1930_v37 = vld [vmem:[%s1842_s21 + $0x2] sm:$0xff]  ;;  %v1951_v43 = vld [vmem:[%s1842_s21 + $0x1a] sm:$0xff]  ;;  %s1954_s11 = sld [smem:[#allocation2 + $0x23]] }
  0x36   : > { %v553_v24 = vmul.f32 %v1896_v22, %v552_v23  ;;  %v340_v25 = vstv %s1890_s6  ;;  %v300_v32 = vmul.f32 %v1911_v29, %v298_v5  ;;  %v540_v34 = vmul.f32 %v1919_v33, %v538_v17  ;;  %v1938_v39 = vld [vmem:[%s1842_s21 + $0x69] sm:$0xff]  ;;  %s1959_s12 = sld [smem:[#allocation2 + $0xe]]  ;;  %v1975_v50 = vld [vmem:[%s1842_s21 + $0x32] sm:$0xff]  ;;  %v1983_v52 = vld [vmem:[%s1842_s21] sm:$0xff] }
  0x37   : > { %v341_v27 = vmul.f32 %v1896_v22, %v340_v25  ;;  %v328_v35 = vmul.f32 %v1919_v33, %v326_v19  ;;  %v526_v36 = vmul.f32 %v1907_v28, %v524_v9  ;;  %v780_v38 = vstv %s1921_s7  ;;  %s1965_s13 = sld [smem:[#allocation2 + $0xf]]  ;;  %v2002_v58 = vld [vmem:[%s1842_s21 + $0x18] sm:$0xff]  ;;  %v2026_v3 = vld [vmem:[%s1842_s21 + $0x30] sm:$0xff]  ;;  %v2051_v12 = vld [vmem:[%s1842_s21 + $0x62] sm:$0xff] }
  0x38   : > { %v781_v40 = vmul.f32 %v780_v38, %v1930_v37  ;;  %v554_v41 = vmul.f32 %v1938_v39, %v552_v23  ;;  %v342_v42 = vmul.f32 %v1938_v39, %v340_v25  ;;  %v994_v44 = vstv %s1933_s8  ;;  %s1978_s14 = sld [smem:[#allocation2 + $0x1e]]  ;;  %v2034_v6 = vld [vmem:[%s1842_s21 + $0x4a] sm:$0xff] }
  0x39   : > { %v794_v45 = vstv %s1940_s9  ;;  %v995_v46 = vmul.f32 %v1951_v43, %v994_v44  ;;  %s1986_s22 = sld [smem:[#allocation2 + $0x1f]] }
  0x3a   : > { %v980_v47 = vstv %s1945_s10  ;;  %v795_v48 = vmul.f32 %v1951_v43, %v794_v45  ;;  %s1992_s24 = sld [smem:[#allocation2 + $0x22]] }
  0x3b   : > { %v981_v49 = vmul.f32 %v980_v47, %v1930_v37  ;;  %v808_v51 = vstv %s1954_s11  ;;  %s2005_s29 = sld [smem:[#allocation2 + $0x2f]] }
  0x3c   : > { %529 = vrot.lane.b32.xlu2 %v525_v11, %s2807_s26  ;;  %515 = vrot.lane.b32.xlu1 %v511_v13, %s2807_s26  ;;  %v596_v53 = vstv %s1959_s12  ;;  %v809_v54 = vmul.f32 %v1975_v50, %v808_v51  ;;  %s2010_s30 = sld [smem:[#allocation2 + $0x32]] }
  0x3d   : > { %501 = vrot.lane.b32.xlu0 %v497_v14, %s2807_s26  ;;  %v394_v55 = vstv %s1965_s13  ;;  %v597_v56 = vmul.f32 %v596_v53, %v1983_v52  ;;  %s2016_s5 = sld [smem:[#allocation2 + $0x33]]  ;;  %v2059_v14 = vld [vmem:[%s1842_s21 + $0xa] sm:$0xff] }
  0x3e   : > { %v395_v57 = vmul.f32 %v394_v55, %v1983_v52  ;;  %v610_v59 = vstv %s1978_s14  ;;  %s2029_s6 = sld [smem:[#allocation2 + $0x43]]  ;;  %v782_v19 = vmul.f32 %v780_v38, %v2059_v14 }
  0x3f   : > { %v408_v60 = vstv %s1986_s22  ;;  %v611_v61 = vmul.f32 %v2002_v58, %v610_v59  ;;  %s2041_s0 = sld [smem:[#allocation2 + $0x2e]] }
  0x40   : > { %v1008_v62 = vstv %s1992_s24  ;;  %v409_v63 = vmul.f32 %v2002_v58, %v408_v60  ;;  %s2054_s1 = sld [smem:[#allocation2 + $0x3f]] }
  0x41   : > { %v1009_v1 = vmul.f32 %v1975_v50, %v1008_v62  ;;  %v422_v5 = vstv %s2005_s29  ;;  %s2061_s23 = sld [smem:[#allocation2 + $0x42]] }
  0x42   : > { %v1022_v7 = vstv %s2010_s30  ;;  %v423_v8 = vmul.f32 %v2026_v3, %v422_v5  ;;  %s2070_s19 = sld [smem:[#allocation2 + $0x5]] }
  0x43   : > { %v822_v9 = vstv %s2016_s5  ;;  %v1023_v10 = vmul.f32 %v2034_v6, %v1022_v7  ;;  %s2087_s7 = sld [smem:[#allocation2 + $0x25]] }
  0x44   : > { %291 = vrot.lane.b32.xlu2 %v286_v18, %s2807_s26  ;;  %543 = vrot.lane.b32.xlu1 %v539_v20, %s2807_s26  ;;  %v823_v11 = vmul.f32 %v2034_v6, %v822_v9  ;;  %v836_v13 = vstv %s2029_s6  ;;  %s2092_s17 = sld [smem:[#allocation2 + $0x3e]] }
  0x45   : > { %331 = vrot.lane.b32.xlu0 %v327_v21, %s2807_s26  ;;  %v837_v17 = vmul.f32 %v2051_v12, %v836_v13  ;;  %v624_v18 = vstv %s2041_s0  ;;  %v2079_v21 = vld [vmem:[%s1842_s21 + $0x48] sm:$0xff]  ;;  %s2094_s27 = sld [smem:[#allocation2 + $0x35]] }
  0x46   : > { %v625_v20 = vmul.f32 %v2026_v3, %v624_v18  ;;  %v436_v23 = vstv %s2054_s1  ;;  %s2099_s15 = sld [smem:[#allocation2 + $0x4]] }
  0x47   : > { %v1036_v25 = vstv %s2061_s23  ;;  %s2106_s20 = sld [smem:[#allocation2 + $0x14]] }
  0x48   : > { %s2112_s4 = sld [smem:[#allocation2 + $0x4f]] }
  0x49   : > { %s2117_s10 = sld [smem:[#allocation2 + $0x45]] }
  0x4a   : > { %s2127_s25 = sld [smem:[#allocation2 + $0x24]] }
  0x4b   : > { %s2145_s8 = sld [smem:[#allocation2 + $0x34]] }
  0x4c   : > { %557 = vrot.lane.b32.xlu2 %v553_v24, %s2807_s26  ;;  %503 = vrot.lane.b32.xlu1 %v498_v26, %s2807_s26  ;;  %v437_v26 = vmul.f32 %v2079_v21, %v436_v23  ;;  %s2223_s9 = sld [smem:[#allocation2 + $0x1c]] }
  0x4d   : > { %345 = vrot.lane.b32.xlu0 %v341_v27, %s2807_s26  ;;  %v1037_v27 = vmul.f32 %v2051_v12, %v1036_v25  ;;  %s2233_s11 = sld [smem:[#allocation2 + $0x2c]] }
  0x4e   : > { %s2245_s12 = sld [smem:[#allocation2 + $0x3c]] }
  0x4f   : > { %s2248_s13 = sld [smem:[#allocation2 + $0xd]] }
  0x50   : > { %s2276_s14 = sld [smem:[#allocation2 + $0x2d]] }
  0x51   : > { %s2289_s0 = sld [smem:[#allocation2 + $0x3d]] }
  0x52   : > { %s2297_s22 = sld [smem:[#allocation2 + $0x1]] }
  0x53   : > { %s2311_s24 = sld [smem:[#allocation2 + $0x11]] }
  0x54   : > { %319 = vrot.lane.b32.xlu2 %v314_v30, %s2807_s26  ;;  %517 = vrot.lane.b32.xlu1 %v512_v31, %s2807_s26  ;;  %v982_v30 = vmul.f32 %v980_v47, %v2059_v14  ;;  %v242_v31 = vstv %s2070_s19  ;;  %s2255_s19 = sld [smem:[#allocation2 + $0x4c]] }
  0x55   : > { %305 = vrot.lane.b32.xlu0 %v300_v32, %s2807_s26  ;;  %v243_v38 = vmul.f32 %v242_v31, %v1857_v4  ;;  %s2333_s29 = sld [smem:[#allocation2 + $0x21]] }
  0x56   : > { %s2345_s1 = sld [smem:[#allocation2]] }
  0x57   : > { %s2350_s30 = sld [smem:[#allocation2 + $0x10]] }
  0x58   : > { %s2353_s5 = sld [smem:[#allocation2 + $0x31]] }
  0x59   : > { %s2359_s23 = sld [smem:[#allocation2 + $0x1b]] }
  0x5a   : > { %s2369_s6 = sld [smem:[#allocation2 + $0xa]] }
  0x5b   : > { %s2439_s18 = sld [smem:[#allocation2 + $0x1a]] }
  0x5c   : > { %545 = vrot.lane.b32.xlu2 %v540_v34, %s2807_s26  ;;  %333 = vrot.lane.b32.xlu1 %v328_v35, %s2807_s26  ;;  %v2110_v34 = vld [vmem:[%s1842_s21 + $0x22] sm:$0xff]  ;;  %s2473_s16 = sld [smem:[#allocation2 + $0x3b]] }
  0x5d   : > { %531 = vrot.lane.b32.xlu0 %v526_v36, %s2807_s26 }
  0x64   : > { %785 = vrot.lane.b32.xlu2 %v781_v40, %s2807_s26  ;;  %559 = vrot.lane.b32.xlu1 %v554_v41, %s2807_s26  ;;  %v260_v40 = vstv %s2087_s7  ;;  %v996_v41 = vmul.f32 %v2110_v34, %v994_v44  ;;  %v450_v44 = vstv %s2112_s4  ;;  %s2378_s7 = sld [smem:[#allocation2 + $0x20]] }
  0x65   : > { %347 = vrot.lane.b32.xlu0 %v342_v42, %s2807_s26  ;;  %v2817_v42 = vstv %s2092_s17  ;;  %v261_v47 = vmul.f32 %v1847_v0, %v260_v40  ;;  %s2416_s4 = sld [smem:[#allocation2 + $0x2a]] }
  0x6c   : > { %999 = vrot.lane.b32.xlu2 %v995_v46, %s2807_s26  ;;  %799 = vrot.lane.b32.xlu1 %v795_v48, %s2807_s26  ;;  %v796_v46 = vmul.f32 %v2110_v34, %v794_v45  ;;  %v2150_v45 = vld [vmem:[%s1842_s21 + $0x8] sm:$0xff] }
  0x6d   : > { %985 = vrot.lane.b32.xlu0 %v981_v49, %s2807_s26  ;;  %v639_v49 = vmul.f32 %v2079_v21, %v2817_v42  ;;  %v2211_v42 = vld [vmem:[%s1842_s21 + $0x52] sm:$0xff] }
  0x74   : > { %813 = vrot.lane.b32.xlu2 %v809_v54, %s2807_s26  ;;  %601 = vrot.lane.b32.xlu1 %v597_v56, %s2807_s26  ;;  %v269_v54 = vstv %s2094_s27  ;;  %v466_v56 = vstv %s2099_s15  ;;  %s2166_s15 = sld [smem:[#allocation2 + $0x44]] }
  0x75   : > { %399 = vrot.lane.b32.xlu0 %v395_v57, %s2807_s26  ;;  %v472_v57 = vstv %s2106_s20  ;;  %s2171_s20 = sld [smem:[#allocation2 + $0x4e]] }
  0x76   : > { %s2308_s27 = sld [smem:[#allocation2 + $0x4d]] }
  0x7c   : > { %615 = vrot.lane.b32.xlu2 %v611_v61, %s2807_s26  ;;  %413 = vrot.lane.b32.xlu1 %v409_v63, %s2807_s26  ;;  %v2156_v63 = vld [vmem:[%s1842_s21 + $0x60] sm:$0xff] }
  0x7d   : > { %1013 = vrot.lane.b32.xlu0 %v1009_v1, %s2807_s26  ;;  %v270_v1 = vmul.f32 %v1885_v16, %v269_v54 }
  0x84   : > { %427 = vrot.lane.b32.xlu2 %v423_v8, %s2807_s26  ;;  %1027 = vrot.lane.b32.xlu1 %v1023_v10, %s2807_s26  ;;  %v467_v10 = vmul.f32 %v466_v56, %v1857_v4 }
  0x85   : > { %827 = vrot.lane.b32.xlu0 %v823_v11, %s2807_s26  ;;  %s2075_s26 = sld [smem:[#allocation2 + $0x15]]  ;;  %v473_v11 = vmul.f32 %v1851_v2, %v472_v57 }
  0x8b   : > { %v251_v32 = vstv %s2075_s26  ;;  %s2261_s26 = sld [smem:[#allocation2 + $0x1d]] }
  0x8c   : > { %841 = vrot.lane.b32.xlu2 %v837_v17, %s2841_s28  ;;  %787 = vrot.lane.b32.xlu1 %v782_v19, %s2841_s28  ;;  %v252_v36 = vmul.f32 %v1851_v2, %v251_v32  ;;  %v278_v17 = vstv %s2117_s10  ;;  %v478_v19 = vstv %s2127_s25  ;;  %s2216_s25 = sld [smem:[#allocation2 + $0xc]] }
  0x8d   : > { %629 = vrot.lane.b32.xlu0 %v625_v20, %s2841_s28  ;;  %v598_v20 = vmul.f32 %v596_v53, %v2150_v45  ;;  %v484_v53 = vstv %s2145_s8  ;;  %s2384_s10 = sld [smem:[#allocation2 + $0xb]] }
  0x8e   : > { %v2083_v24 = vpop.permute.xlu2 %317  ;;  %v254_v48 = vadd.f32 %v252_v36, %v243_v38  ;;  %v475_v36 = vadd.f32 %v473_v11, %v467_v10  ;;  %v479_v38 = vmul.f32 %v1847_v0, %v478_v19  ;;  %v652_v10 = vstv %s2171_s20  ;;  %s2395_s8 = sld [smem:[#allocation2 + $0x41]] }
  0x8f   : > { %s2433_s20 = sld [smem:[#allocation2 + $0x40]] }
  0x90   : > { %v263_v8 = vadd.f32 %v261_v47, %v254_v48  ;;  %v481_v48 = vadd.f32 %v479_v38, %v475_v36  ;;  %v653_v38 = vmul.f32 %v2156_v63, %v652_v10 }
  0x94   : > { %441 = vrot.lane.b32.xlu2 %v437_v26, %s2841_s28  ;;  %1041 = vrot.lane.b32.xlu1 %v1037_v27, %s2841_s28  ;;  %v451_v26 = vmul.f32 %v2156_v63, %v450_v44  ;;  %v279_v27 = vmul.f32 %v1896_v22, %v278_v17 }
  0x95   : > { %987 = vrot.lane.b32.xlu0 %v982_v30, %s2841_s28  ;;  %v272_v30 = vadd.f32 %v270_v1, %v263_v8  ;;  %v2193_v1 = vld [vmem:[%s1842_s21 + $0x3a] sm:$0xff] }
  0x96   : > { %v2115_v35 = vpop.permute.xlu2 %529  ;;  %v1010_v11 = vmul.f32 %v2193_v1, %v1008_v62 }
  0x97   : > { %v281_v47 = vadd.f32 %v279_v27, %v272_v30  ;;  %v810_v27 = vmul.f32 %v2193_v1, %v808_v51 }
  0x9c   : > { %1001 = vrot.lane.b32.xlu2 %v996_v41, %s2841_s28  ;;  %801 = vrot.lane.b32.xlu1 %v796_v46, %s2841_s28  ;;  %v396_v41 = vmul.f32 %v394_v55, %v2150_v45  ;;  %v490_v55 = vstv %s2166_s15  ;;  %s2406_s15 = sld [smem:[#allocation2 + $0x30]] }
  0x9d   : > { %643 = vrot.lane.b32.xlu0 %v639_v49, %s2841_s28  ;;  %v485_v49 = vmul.f32 %v1885_v16, %v484_v53  ;;  %v491_v36 = vmul.f32 %v1896_v22, %v490_v55 }
  0x9e   : > { %v2153_v61 = vpop.permute.xlu2 %291 }
  0x9f   : > { %v487_v30 = vadd.f32 %v485_v49, %v481_v48  ;;  %v2221_v48 = vld [vmem:[%s1842_s21 + $0x20] sm:$0xff] }
  0xa1   : > { %v493_v51 = vadd.f32 %v491_v36, %v487_v30  ;;  %v410_v30 = vmul.f32 %v2221_v48, %v408_v60  ;;  %v253_v36 = vmul.f32 %v1911_v29, %v251_v32  ;;  %v566_v60 = vstv %s2216_s25  ;;  %s2502_s25 = sld [smem:[#allocation2 + $0x4a]] }
  0xa4   : > { %603 = vrot.lane.b32.xlu2 %v598_v20, %s2841_s28  ;;  %455 = vrot.lane.b32.xlu1 %v451_v26, %s2841_s28 }
  0xa5   : > { %401 = vrot.lane.b32.xlu0 %v396_v41, %s2841_s28 }
  0xa6   : > { %v2186_v46 = vpop.permute.xlu2 %557  ;;  %v304_v8 = vpop.permute.xlu1 %303 }
  0xa7   : > { %v290_v20 = vpop.permute.xlu0 %289 }
  0xa8   : > { %v295_v26 = vadd.f32 %v290_v20, %v281_v47  ;;  %v474_v20 = vmul.f32 %v1911_v29, %v472_v57 }
  0xaa   : > { %v309_v41 = vadd.f32 %v304_v8, %v295_v26  ;;  %v824_v8 = vmul.f32 %v2211_v42, %v822_v9  ;;  %v468_v26 = vmul.f32 %v466_v56, %v1878_v15  ;;  %v244_v9 = vmul.f32 %v242_v31, %v1878_v15 }
  0xac   : > { %1015 = vrot.lane.b32.xlu2 %v1010_v11, %s2841_s28  ;;  %815 = vrot.lane.b32.xlu1 %v810_v27, %s2841_s28  ;;  %v323_v47 = vadd.f32 %v2083_v24, %v309_v41  ;;  %v612_v24 = vmul.f32 %v2221_v48, %v610_v59  ;;  %v480_v59 = vmul.f32 %v1907_v28, %v478_v19 }
  0xad   : > { %657 = vrot.lane.b32.xlu0 %v653_v38, %s2841_s28  ;;  %v476_v56 = vadd.f32 %v474_v20, %v468_v26  ;;  %v2259_v38 = vld [vmem:[%s1842_s21 + $0x38] sm:$0xff]  ;;  %v262_v19 = vmul.f32 %v1907_v28, %v260_v40  ;;  %v255_v41 = vadd.f32 %v253_v36, %v244_v9  ;;  %v486_v26 = vmul.f32 %v1919_v33, %v484_v53 }
  0xae   : > { %v2214_v62 = vpop.permute.xlu2 %319  ;;  %v516_v49 = vpop.permute.xlu1 %515  ;;  %v1024_v9 = vmul.f32 %v2211_v42, %v1022_v7  ;;  %v271_v53 = vmul.f32 %v1919_v33, %v269_v54 }
  0xaf   : > { %v502_v11 = vpop.permute.xlu0 %501 }
  0xb0   : > { %v507_v27 = vadd.f32 %v502_v11, %v493_v51  ;;  %v572_v51 = vstv %s2223_s9  ;;  %s2520_s9 = sld [smem:[#allocation2 + $0x4b]] }
  0xb2   : > { %v521_v57 = vadd.f32 %v516_v49, %v507_v27  ;;  %v626_v49 = vmul.f32 %v2259_v38, %v624_v18  ;;  %v482_v27 = vadd.f32 %v480_v59, %v476_v56  ;;  %v578_v18 = vstv %s2233_s11  ;;  %v2303_v56 = vld [vmem:[%s1842_s21 + $0x50] sm:$0xff]  ;;  %s2624_s11 = sld [smem:[#allocation2 + $0x18]] }
  0xb3   : > { %v356_v59 = vstv %s2248_s13  ;;  %v579_v54 = vmul.f32 %v2026_v3, %v578_v18  ;;  %s2632_s13 = sld [smem:[#allocation2 + $0x28]] }
  0xb4   : > { %829 = vrot.lane.b32.xlu2 %v824_v8, %s2841_s28  ;;  %617 = vrot.lane.b32.xlu1 %v612_v24, %s2841_s28  ;;  %v535_v32 = vadd.f32 %v2115_v35, %v521_v57  ;;  %v567_v8 = vmul.f32 %v566_v60, %v1983_v52  ;;  %v424_v24 = vmul.f32 %v2259_v38, %v422_v5 }
  0xb5   : > { %415 = vrot.lane.b32.xlu0 %v410_v30, %s2841_s28  ;;  %v573_v30 = vmul.f32 %v2002_v58, %v572_v51  ;;  %v492_v5 = vmul.f32 %v1938_v39, %v490_v55  ;;  %v488_v57 = vadd.f32 %v486_v26, %v482_v27  ;;  %v357_v26 = vmul.f32 %v356_v59, %v1983_v52 }
  0xb6   : > { %v2253_v31 = vpop.permute.xlu2 %545  ;;  %v544_v35 = vpop.permute.xlu1 %543  ;;  %v438_v27 = vmul.f32 %v2303_v56, %v436_v23 }
  0xb7   : > { %v549_v11 = vadd.f32 %v544_v35, %v535_v32  ;;  %v332_v20 = vpop.permute.xlu0 %331  ;;  %v590_v32 = vstv %s2255_s19  ;;  %v2319_v35 = vld [vmem:[%s1842_s21 + $0x6a] sm:$0xff]  ;;  %s2637_s19 = sld [smem:[#allocation2 + $0x19]] }
  0xb8   : > { %v337_v40 = vadd.f32 %v332_v20, %v323_v47  ;;  %v264_v47 = vadd.f32 %v262_v19, %v255_v41  ;;  %v364_v41 = vstv %s2261_s26  ;;  %v1038_v52 = vmul.f32 %v2319_v35, %v1036_v25  ;;  %s2646_s26 = sld [smem:[#allocation2 + $0x38]] }
  0xb9   : > { %v563_v36 = vadd.f32 %v2186_v46, %v549_v11  ;;  %v584_v46 = vstv %s2245_s12  ;;  %v838_v23 = vmul.f32 %v2319_v35, %v836_v13  ;;  %s2626_s12 = sld [smem:[#allocation2 + $0x9]] }
  0xba   : > { %v273_v11 = vadd.f32 %v271_v53, %v264_v47 }
  0xbb   : > { %v569_v7 = vadd.f32 %v567_v8, %v563_v36  ;;  %v280_v8 = vmul.f32 %v1938_v39, %v278_v17  ;;  %v591_v36 = vmul.f32 %v2156_v63, %v590_v32  ;;  %v365_v17 = vmul.f32 %v2002_v58, %v364_v41 }
  0xbc   : > { %631 = vrot.lane.b32.xlu2 %v626_v49, %s2841_s28  ;;  %429 = vrot.lane.b32.xlu1 %v424_v24, %s2841_s28  ;;  %v585_v49 = vmul.f32 %v2079_v21, %v584_v46  ;;  %v494_v24 = vadd.f32 %v492_v5, %v488_v57  ;;  %v380_v5 = vstv %s2289_s0  ;;  %s2655_s0 = sld [smem:[#allocation2 + $0x48]] }
  0xbd   : > { %v575_v19 = vadd.f32 %v573_v30, %v569_v7  ;;  %1029 = vrot.lane.b32.xlu0 %v1024_v9, %s2841_s28  ;;  %v372_v7 = vstv %s2276_s14  ;;  %v282_v57 = vadd.f32 %v280_v8, %v273_v11  ;;  %s2652_s14 = sld [smem:[#allocation2 + $0x29]] }
  0xbe   : > { %v2313_v55 = vpop.permute.xlu2 %785  ;;  %v504_v20 = vpop.permute.xlu1 %503  ;;  %v373_v25 = vmul.f32 %v2026_v3, %v372_v7  ;;  %v381_v3 = vmul.f32 %v2079_v21, %v380_v5 }
  0xbf   : > { %v346_v30 = vpop.permute.xlu0 %345  ;;  %v581_v9 = vadd.f32 %v579_v54, %v575_v19  ;;  %v388_v54 = vstv %s2308_s27  ;;  %v742_v19 = vstv %s2297_s22  ;;  %s2659_s22 = sld [smem:[#allocation2 + $0x39]] }
  0xc0   : > { %v351_v53 = vadd.f32 %v346_v30, %v337_v40  ;;  %v508_v40 = vadd.f32 %v504_v20, %v494_v24  ;;  %v2376_v20 = vld [vmem:[%s1842_s21 + $0x68] sm:$0xff]  ;;  %v389_v21 = vmul.f32 %v2156_v63, %v388_v54  ;;  %s2668_s27 = sld [smem:[#allocation2 + $0x49]] }
  0xc1   : > { %v587_v47 = vadd.f32 %v585_v49, %v581_v9  ;;  %v2820_v49 = vstv %s2311_s24  ;;  %v654_v24 = vmul.f32 %v2376_v20, %v652_v10  ;;  %v2819_v10 = vstv %s2333_s29 }
  0xc2   : > { %v359_v58 = vadd.f32 %v357_v26, %v351_v53  ;;  %v296_v26 = vadd.f32 %v2153_v61, %v282_v57  ;;  %v751_v9 = vmul.f32 %v1951_v43, %v2820_v49  ;;  %v950_v57 = vstv %s2345_s1 }
  0xc3   : > { %v2361_v13 = vadd.f32 %v591_v36, %v587_v47  ;;  %v743_v36 = vmul.f32 %v742_v19, %v1930_v37 }
  0xc4   : > { %443 = vrot.lane.b32.xlu2 %v438_v27, %s2841_s28  ;;  %v367_v8 = vadd.f32 %v365_v17, %v359_v58  ;;  %1043 = vrot.lane.b32.xlu1 %v1038_v52, %s2841_s28  ;;  %v452_v52 = vmul.f32 %v2376_v20, %v450_v44  ;;  %v956_v58 = vstv %s2350_s30 }
  0xc5   : > { %843 = vrot.lane.b32.xlu0 %v838_v23, %s2841_s28  ;;  %v2842_v23 = vstv %s2092_s17  ;;  %v753_v44 = vadd.f32 %v751_v9, %v743_v36  ;;  %s2422_s17 = sld [smem:[#allocation2 + $0x2b]]  ;;  %v880_v9 = vstv %s2384_s10 }
  0xc6   : > { %v2367_v11 = vpop.permute.xlu2 %999  ;;  %v518_v27 = vpop.permute.xlu1 %517  ;;  %v375_v30 = vadd.f32 %v373_v25, %v367_v8  ;;  %v640_v47 = vmul.f32 %v2303_v56, %v2842_v23  ;;  %v759_v8 = vmul.f32 %v1975_v50, %v2819_v10  ;;  %s2465_s10 = sld [smem:[#allocation2 + $0x3a]] }
  0xc7   : > { %v522_v61 = vadd.f32 %v518_v27, %v508_v40  ;;  %v306_v17 = vpop.permute.xlu0 %305 }
  0xc8   : > { %v310_v53 = vadd.f32 %v306_v17, %v296_v26  ;;  %v383_v63 = vadd.f32 %v381_v3, %v375_v30  ;;  %v894_v3 = vstv %s2359_s23  ;;  %v2821_v26 = vstv %s2353_s5 }
  0xc9   : > { %v962_v30 = vstv %s2378_s7  ;;  %v895_v17 = vmul.f32 %v1851_v2, %v894_v3 }
  0xca   : > { %v324_v25 = vadd.f32 %v2214_v62, %v310_v53  ;;  %v2410_v40 = vadd.f32 %v389_v21, %v383_v63  ;;  %v951_v62 = vmul.f32 %v950_v57, %v1930_v37  ;;  %v1080_v21 = vstv %s2369_s6 }
  0xcb   : > { %v761_v37 = vadd.f32 %v759_v8, %v753_v44  ;;  %v2823_v53 = vstv %s2395_s8  ;;  %v963_v49 = vmul.f32 %v1975_v50, %v962_v30  ;;  %v881_v44 = vmul.f32 %v880_v9, %v1857_v4 }
  0xcc   : > { %659 = vrot.lane.b32.xlu2 %v654_v24, %s2841_s28  ;;  %457 = vrot.lane.b32.xlu1 %v452_v52, %s2841_s28  ;;  %v957_v24 = vmul.f32 %v1951_v43, %v956_v58  ;;  %v767_v43 = vmul.f32 %v2034_v6, %v2821_v26  ;;  %v968_v8 = vstv %s2406_s15 }
  0xcd   : > { %645 = vrot.lane.b32.xlu0 %v640_v47, %s2841_s28  ;;  %v1081_v47 = vmul.f32 %v1080_v21, %v1857_v4 }
  0xce   : > { %v2420_v27 = vpop.permute.xlu2 %813  ;;  %v334_v36 = vpop.permute.xlu1 %333  ;;  %v959_v10 = vadd.f32 %v957_v24, %v951_v62  ;;  %v1108_v62 = vstv %s2416_s4  ;;  %v568_v24 = vmul.f32 %v566_v60, %v2150_v45 }
  0xcf   : > { %v338_v52 = vadd.f32 %v334_v36, %v324_v25  ;;  %v532_v63 = vpop.permute.xlu0 %531  ;;  %v775_v25 = vmul.f32 %v2051_v12, %v2823_v53  ;;  %v908_v36 = vstv %s2422_s17 }
  0xd0   : > { %v536_v23 = vadd.f32 %v532_v63, %v522_v61  ;;  %v769_v61 = vadd.f32 %v767_v43, %v761_v37  ;;  %v965_v4 = vadd.f32 %v963_v49, %v959_v10  ;;  %v358_v49 = vmul.f32 %v356_v59, %v2150_v45 }
  0xd1   : > { %v1109_v10 = vmul.f32 %v1847_v0, %v1108_v62  ;;  %v574_v63 = vmul.f32 %v2221_v48, %v572_v51  ;;  %v909_v53 = vmul.f32 %v1847_v0, %v908_v36 }
  0xd2   : > { %v550_v26 = vadd.f32 %v2253_v31, %v536_v23  ;;  %v969_v31 = vmul.f32 %v2034_v6, %v968_v8  ;;  %v1094_v6 = vstv %s2439_s18  ;;  %v777_v43 = vadd.f32 %v775_v25, %v769_v61  ;;  %s1743_s18 = smov 126  }
  0xd3   : > { %v366_v23 = vmul.f32 %v2221_v48, %v364_v41  ;;  %v1095_v51 = vmul.f32 %v1851_v2, %v1094_v6  ;;  %v580_v48 = vmul.f32 %v2259_v38, %v578_v18  ;;  %v374_v18 = vmul.f32 %v2259_v38, %v372_v7 }
  0xd4   : > { %899 = vrot.lane.b32.xlu2 %v895_v17, %s2841_s28  ;;  %1085 = vrot.lane.b32.xlu1 %v1081_v47, %s2841_s28  ;;  %v974_v17 = vstv %s2433_s20  ;;  %v971_v45 = vadd.f32 %v969_v31, %v965_v4  ;;  %v791_v0 = vadd.f32 %v2313_v55, %v777_v43  ;;  %v1122_v4 = vstv %s2465_s10 }
  0xd5   : > { %885 = vrot.lane.b32.xlu0 %v881_v44, %s2841_s28  ;;  %v975_v59 = vmul.f32 %v2051_v12, %v974_v17  ;;  %v586_v12 = vmul.f32 %v2303_v56, %v584_v46  ;;  %v922_v55 = vstv %s2473_s16  ;;  %v592_v31 = vmul.f32 %v2376_v20, %v590_v32  ;;  %s1742_s16 = smov 127  }
  0xd6   : > { %v2460_v50 = vpop.permute.xlu2 %615  ;;  %v560_v37 = vpop.permute.xlu1 %559  ;;  %v382_v38 = vmul.f32 %v2303_v56, %v380_v5  ;;  %v1123_v43 = vmul.f32 %v1885_v16, %v1122_v4  ;;  %v1136_v56 = vstv %s2502_s25 }
  0xd7   : > { %v564_v60 = vadd.f32 %v560_v37, %v550_v26  ;;  %v348_v47 = vpop.permute.xlu0 %347  ;;  %v977_v25 = vadd.f32 %v975_v59, %v971_v45  ;;  %v882_v37 = vmul.f32 %v880_v9, %v1878_v15  ;;  %v936_v45 = vstv %s2520_s9  ;;  %s2847_s9 = sld [smem:[#allocation9_spill]] }
  0xd8   : > { %v352_v44 = vadd.f32 %v348_v47, %v338_v52  ;;  %v937_v59 = vmul.f32 %v1896_v22, %v936_v45 }
  0xd9   : > { %v570_v61 = vadd.f32 %v568_v24, %v564_v60 }
  0xda   : > { %v360_v41 = vadd.f32 %v358_v49, %v352_v44 }
  0xdb   : > { %v576_v26 = vadd.f32 %v574_v63, %v570_v61  ;;  %v923_v63 = vmul.f32 %v1885_v16, %v922_v55 }
  0xdc   : > { %1113 = vrot.lane.b32.xlu2 %v1109_v10, %s2841_s28  ;;  %v368_v52 = vadd.f32 %v366_v23, %v360_v41  ;;  %913 = vrot.lane.b32.xlu1 %v909_v53, %s2841_s28  ;;  %v390_v23 = vmul.f32 %v2376_v20, %v388_v54  ;;  %v1137_v54 = vmul.f32 %v1896_v22, %v1136_v56 }
  0xdd   : > { %1099 = vrot.lane.b32.xlu0 %v1095_v51, %s2841_s28  ;;  %v582_v24 = vadd.f32 %v580_v48, %v576_v26  ;;  %v910_v48 = vmul.f32 %v1907_v28, %v908_v36  ;;  %v1096_v26 = vmul.f32 %v1911_v29, %v1094_v6  ;;  %v952_v22 = vmul.f32 %v950_v57, %v2059_v14 }
  0xde   : > { %v2508_v2 = vpop.permute.xlu2 %427  ;;  %v800_v46 = vpop.permute.xlu1 %799  ;;  %v376_v9 = vadd.f32 %v374_v18, %v368_v52  ;;  %v964_v57 = vmul.f32 %v2193_v1, %v962_v30  ;;  %v970_v30 = vmul.f32 %v2211_v42, %v968_v8 }
  0xdf   : > { %v805_v53 = vadd.f32 %v800_v46, %v791_v0  ;;  %v986_v49 = vpop.permute.xlu0 %985  ;;  %v588_v10 = vadd.f32 %v586_v12, %v582_v24  ;;  %v1124_v12 = vmul.f32 %v1919_v33, %v1122_v4  ;;  %v2843_v24 = vstv %s2311_s24 }
  0xe0   : > { %v991_v7 = vadd.f32 %v986_v49, %v977_v25  ;;  %v384_v5 = vadd.f32 %v382_v38, %v376_v9  ;;  %v924_v25 = vmul.f32 %v1919_v33, %v922_v55  ;;  %v752_v4 = vmul.f32 %v2110_v34, %v2843_v24 }
  0xe1   : > { %v819_v32 = vadd.f32 %v2420_v27, %v805_v53  ;;  %v2528_v60 = vadd.f32 %v592_v31, %v588_v10  ;;  %v744_v31 = vmul.f32 %v742_v19, %v2059_v14  ;;  %v976_v49 = vmul.f32 %v2319_v35, %v974_v17 }
  0xe2   : > { %v1005_v47 = vadd.f32 %v2367_v11, %v991_v7  ;;  %v2538_v16 = vadd.f32 %v390_v23, %v384_v5  ;;  %v1082_v11 = vmul.f32 %v1080_v21, %v1878_v15  ;;  %v896_v15 = vmul.f32 %v1911_v29, %v894_v3 }
  0xe3   : > { %v958_v21 = vmul.f32 %v2110_v34, %v956_v58  ;;  %v1110_v58 = vmul.f32 %v1907_v28, %v1108_v62  ;;  %v754_v28 = vadd.f32 %v752_v4, %v744_v31  ;;  %v2844_v62 = vstv %s2333_s29 }
  0xe4   : > { %887 = vrot.lane.b32.xlu2 %v882_v37, %s2841_s28  ;;  %1127 = vrot.lane.b32.xlu1 %v1123_v43, %s2841_s28  ;;  %v760_v14 = vmul.f32 %v2193_v1, %v2844_v62  ;;  %v1138_v37 = vmul.f32 %v1938_v39, %v1136_v56  ;;  %v2845_v38 = vstv %s2353_s5  ;;  %v938_v7 = vmul.f32 %v1938_v39, %v936_v45  ;;  %s2850_s5 = sld [smem:[#allocation20_spill]] }
  0xe5   : > { %927 = vrot.lane.b32.xlu0 %v923_v63, %s2841_s28  ;;  %v960_v18 = vadd.f32 %v958_v21, %v952_v22  ;;  %v768_v8 = vmul.f32 %v2211_v42, %v2845_v38  ;;  %v2846_v1 = vstv %s2395_s8  ;;  %v1056_v62 = vstv %s2624_s11 }
  0xe6   : > { %v842_v44 = vpop.permute.xlu2 %841  ;;  %v2540_v27 = vpop.permute.xlu1 %601  ;;  %v762_v10 = vadd.f32 %v760_v14, %v754_v28 }
  0xe7   : > { %v400_v20 = vpop.permute.xlu0 %399  ;;  %v966_v33 = vadd.f32 %v964_v57, %v960_v18 }
  0xe8   : > { %v770_v63 = vadd.f32 %v768_v8, %v762_v10  ;;  %v1062_v10 = vstv %s2632_s13 }
  0xe9   : > { %v972_v53 = vadd.f32 %v970_v30, %v966_v33  ;;  %v1631_v30 = vld [vmem:[%s1842_s21 + $0x1] sm:$0xff] }
  0xea   : > { %s1676_s20 = scalar_lea.hbm %s2850_s5, 64 }
  0xeb   : > { %v978_v43 = vadd.f32 %v976_v49, %v972_v53 }
  0xec   : > { %1141 = vrot.lane.b32.xlu2 %v1137_v54, %s2841_s28  ;;  %1087 = vrot.lane.b32.xlu1 %v1082_v11, %s2841_s28 }
  0xed   : > { %941 = vrot.lane.b32.xlu0 %v937_v59, %s2841_s28 }
  0xee   : > { %v442_v61 = vpop.permute.xlu2 %441  ;;  %v414_v51 = vpop.permute.xlu1 %413 }
  0xef   : > { %v1014_v41 = vpop.permute.xlu0 %1013 }
  0xf0   : > { %v1019_v0 = vadd.f32 %v1014_v41, %v1005_v47 }
  0xf4   : > { %915 = vrot.lane.b32.xlu2 %v910_v48, %s2841_s28  ;;  %1101 = vrot.lane.b32.xlu1 %v1096_v26, %s2841_s28 }
  0xf5   : > { %901 = vrot.lane.b32.xlu0 %v896_v15, %s2841_s28 }
  0xf6   : > { %v1028_v36 = vpop.permute.xlu1 %1027  ;;  %v1002_v6 = vpop.permute.xlu2 %1001 }
  0xf7   : > { %v2570_v29 = vadd.f32 %v1028_v36, %v1019_v0  ;;  %v828_v3 = vpop.permute.xlu0 %827  ;;  %v607_v0 = vadd.f32 %v2540_v27, %v2361_v13 }
  0xf8   : > { %v833_v52 = vadd.f32 %v828_v3, %v819_v32  ;;  %v776_v32 = vmul.f32 %v2319_v35, %v2846_v1 }
  0xfa   : > { %v2585_v46 = vadd.f32 %v842_v44, %v833_v52  ;;  %v778_v17 = vadd.f32 %v776_v32, %v770_v63  ;;  %v405_v44 = vadd.f32 %v400_v20, %v2410_v40  ;;  %v621_v40 = vadd.f32 %v2460_v50, %v607_v0  ;;  %v1633_v32 = vld [vmem:[%s1842_s21 + $0x31] sm:$0xff] }
  0xfb   : > { %v856_v63 = vstv %s2637_s19  ;;  %v868_v0 = vstv %s2659_s22 }
  0xfc   : > { %1129 = vrot.lane.b32.xlu2 %v1124_v12, %s2841_s28  ;;  %929 = vrot.lane.b32.xlu1 %v924_v25, %s2841_s28  ;;  %v419_v39 = vadd.f32 %v414_v51, %v405_v44  ;;  %v862_v44 = vstv %s2652_s14  ;;  %s2848_s14 = sld [smem:[#allocation11_spill]] }
  0xfd   : > { %1115 = vrot.lane.b32.xlu0 %v1110_v58, %s2841_s28 }
  0xfe   : > { %v788_v19 = vpop.permute.xlu1 %787  ;;  %v604_v55 = vpop.permute.xlu2 %603  ;;  %v433_v48 = vadd.f32 %v2508_v2, %v419_v39  ;;  %v1634_v39 = vld [vmem:[%s1842_s21 + $0x49] sm:$0xff] }
  0xff   : > { %v630_v34 = vpop.permute.xlu0 %629  ;;  %v792_v45 = vadd.f32 %v788_v19, %v778_v17  ;;  %v608_v4 = vadd.f32 %v604_v55, %v2528_v60 }
 0x100   : > { %v447_v41 = vadd.f32 %v442_v61, %v433_v48  ;;  %v635_v20 = vadd.f32 %v630_v34, %v621_v40  ;;  %v850_v34 = vstv %s2626_s12  ;;  %v869_v40 = vmul.f32 %v1634_v39, %v868_v0 }
 0x102   : > { %s1558_s24 = sshll.u32 %s2848_s14, 5 }
 0x103   : > { %s1321_s23 = scalar_lea.hbm %s2850_s5, %s1558_s24 }
 0x104   : > { %1143 = vrot.lane.b32.xlu1 %v1138_v37, %s2841_s28  ;;  %v1632_v37 = vld [vmem:[%s1842_s21 + $0x19] sm:$0xff]  ;;  %s1324_s7 = sshll.u32 %s1321_s23, 4  ;;  %s1325_s7 = int_to_ptr.hbm [resolvable:$true] %s1324_s7 }
 0x105   : > { %943 = vrot.lane.b32.xlu0 %v938_v7, %s2841_s28  ;;  %s2620_s28 = sld [smem:[#allocation2 + $0x8]]  ;;  %v1057_v60 = vmul.f32 %v1632_v37, %v1056_v62  ;;  %v851_v7 = vmul.f32 %v1631_v30, %v850_v34  ;;  %s1670_s8 = sshra.s32 %s1325_s7, 4  ;;  %s1671_s8 = int_to_ptr.hbm [resolvable:$true] %s1670_s8 }
 0x106   : > { %v1042_v9 = vpop.permute.xlu1 %1041  ;;  %v1016_v56 = vpop.permute.xlu2 %1015  ;;  %s1672_s15 = scalar_lea.hbm %s1671_s8, 32  ;;  %p1677_p5 = scmp.lt.s32.totalorder %s1671_s8, %s2850_s5 }
 0x107   : > { %v988_v23 = vpop.permute.xlu0 %987  ;;  %v1047_v33 = vadd.f32 %v1042_v9, %v2570_v29  ;;  %v1063_v9 = vmul.f32 %v1633_v32, %v1062_v10  ;;  %v853_v17 = vadd.f32 %v851_v7, %v2585_v46  ;;  %p1673_p1 = scmp.ne.s32.totalorder %s1671_s8, %s1672_s15  ;;  %p1678_p6 = scmp.lt.s32.totalorder %s1676_s20, %s1672_s15 }
 0x108   : > { %v992_v47 = vadd.f32 %v988_v23, %v978_v43 }
 0x109   : > { %p1674_p2 = pnand %p1673_p1, %p1811_p4  ;;  %p1679_p7 = por %p1678_p6, %p1677_p5 }
 0x10a   : > { %v1006_v5 = vadd.f32 %v1002_v6, %v992_v47  ;;  %v1068_v47 = vstv %s2646_s26 }
 0x10b   : > { %v1050_v57 = vstv %s2620_s28  ;;  %p1675_p3 = pneg %p1674_p2 }
 0x10c   : > { %v2610_v42 = vadd.f32 %v1016_v56, %v1006_v5  ;;  %v857_v56 = vmul.f32 %v1632_v37, %v856_v63 }
 0x10d   : > { %p1680_p9 = pnand %p1679_p7, %p1675_p3 }
 0x10e   : > { %v802_v54 = vpop.permute.xlu1 %801  ;;  %v830_v35 = vpop.permute.xlu2 %829 }
 0x10f   : > { %v806_v11 = vadd.f32 %v802_v54, %v792_v45  ;;  %v644_v59 = vpop.permute.xlu0 %643  ;;  %v1069_v45 = vmul.f32 %v1634_v39, %v1068_v47  ;;  %v1640_v39 = vld [vmem:[%s1842_s21 + $0x69] sm:$0xff] }
 0x110   : > { %v649_v21 = vadd.f32 %v644_v59, %v635_v20  ;;  %v874_v20 = vstv %s2668_s27 }
 0x116   : > { %v456_v26 = vpop.permute.xlu1 %455  ;;  %v632_v51 = vpop.permute.xlu2 %631 }
 0x117   : > { %v461_v15 = vadd.f32 %v456_v26, %v447_v41  ;;  %v402_v22 = vpop.permute.xlu0 %401  ;;  %v863_v41 = vmul.f32 %v1633_v32, %v862_v44  ;;  %v1635_v26 = vld [vmem:[%s1842_s21 + $0x61] sm:$0xff] }
 0x118   : > { %v406_v18 = vadd.f32 %v402_v22, %v2538_v16  ;;  %v1051_v16 = vmul.f32 %v1631_v30, %v1050_v57 }
 0x119   : > { %704 = vrot.lane.b32.xlu0 %v461_v15, %s1742_s16 }
 0x11a   : > { %v1053_v55 = vadd.f32 %v1051_v16, %v1047_v33 }
 0x11c   : > { %v1059_v1 = vadd.f32 %v1057_v60, %v1053_v55 }
 0x11e   : > { %v816_v36 = vpop.permute.xlu1 %815  ;;  %v444_v13 = vpop.permute.xlu2 %443  ;;  %v1065_v54 = vadd.f32 %v1063_v9, %v1059_v1 }
 0x11f   : > { %v820_v6 = vadd.f32 %v816_v36, %v806_v11  ;;  %v658_v12 = vpop.permute.xlu0 %657  ;;  %v1074_v11 = vstv %s2655_s0  ;;  %s226_s0 = sand.u32 1, %s2847_s9  }
 0x120   : > { %v663_v2 = vadd.f32 %v658_v12, %v649_v21  ;;  %v1075_v46 = vmul.f32 %v1635_v26, %v1074_v11  ;;  %v1071_v15 = vadd.f32 %v1069_v45, %v1065_v54  ;;  %v876_v45 = vmul.f32 %v1640_v39, %v874_v20  ;;  %s1426_s22 = sshll.u32 %s226_s0, 5 }
 0x121   : > { %v2617_v3 = vadd.f32 %v830_v35, %v820_v6  ;;  %v859_v35 = vadd.f32 %v857_v56, %v853_v17  ;;  %s228_s27 = scalar_lea.vmem [#allocation5], %s1426_s22 }
 0x122   : > { %670 = vrot.lane.b32.xlu2 %v663_v2, %s1743_s18  ;;  %s1322_s6 = sshll.u32 %s228_s27, 4  ;;  %s1323_s6 = int_to_ptr.vmem [resolvable:$true] %s1322_s6 }
 0x123   : > { %v865_v22 = vadd.f32 %v863_v41, %v859_v35 }
 0x125   : > { %v871_v2 = vadd.f32 %v869_v40, %v865_v22 }
 0x126   : > { %v618_v27 = vpop.permute.xlu1 %617  ;;  %v660_v25 = vpop.permute.xlu2 %659 }
 0x127   : > { %v416_v61 = vpop.permute.xlu0 %415  ;;  %v622_v14 = vadd.f32 %v618_v27, %v608_v4 }
 0x128   : > { %v420_v31 = vadd.f32 %v416_v61, %v406_v18  ;;  %v1636_v18 = vld [vmem:[%s1842_s21 + $0x9] sm:$0xff] }
 0x129   : > { %v636_v49 = vadd.f32 %v632_v51, %v622_v14  ;;  %v1077_v51 = vadd.f32 %v1075_v46, %v1071_v15 }
 0x12e   : > { %v430_v50 = vpop.permute.xlu1 %429  ;;  %v2644_v19 = vpop.permute.xlu2 %899 }
 0x12f   : > { %v2622_v52 = vpop.permute.xlu0 %1029  ;;  %v434_v28 = vadd.f32 %v430_v50, %v420_v31  ;;  %v852_v31 = vmul.f32 %v1636_v18, %v850_v34  ;;  %v1637_v34 = vld [vmem:[%s1842_s21 + $0x21] sm:$0xff] }
 0x130   : > { %v1034_v50 = vadd.f32 %v2622_v52, %v2610_v42  ;;  %v1485_v42 = vld [vmem:[%s2802_s2 + $0x18] sm:$0xff]  ;;  %v858_v55 = vmul.f32 %v1637_v34, %v856_v63 }
 0x131   : > { %v448_v29 = vadd.f32 %v444_v13, %v434_v28  ;;  %v875_v13 = vmul.f32 %v1635_v26, %v874_v20  ;;  %v1052_v28 = vmul.f32 %v1636_v18, %v1050_v57  ;;  %693 = vmatpush.msra.mxu2 %v1485_v42  ;;  %v1484_v57 = vld [vmem:[%s2802_s2 + $0x10] sm:$0xff] }
 0x133   : > { %v877_v61 = vadd.f32 %v875_v13, %v871_v2  ;;  %694 = vmatpush.msra.mxu2 %v1484_v57 }
 0x135   : > { %1173 = vmatpush.msrb.mxu2 %v1485_v42 }
 0x136   : > { %v2630_v58 = vpop.permute.xlu1 %1043  ;;  %v1114_v5 = vpop.permute.xlu2 %1113 }
 0x137   : > { %v2634_v24 = vpop.permute.xlu0 %843  ;;  %v1048_v14 = vadd.f32 %v2630_v58, %v1034_v50  ;;  %v1058_v58 = vmul.f32 %v1637_v34, %v1056_v62  ;;  %1174 = vmatpush.msrb.mxu2 %v1484_v57  ;;  %v736_v34 = vld [vmem:[%s2803_s3 + $0x8] sm:$0xff]  ;;  %v738_v57 = vld [vmem:[%s2803_s3 + $0x18] sm:$0xff] }
 0x138   : > { %v848_v4 = vadd.f32 %v2634_v24, %v2617_v3 }
 0x13a   : > { %v854_v3 = vadd.f32 %v852_v31, %v848_v4 }
 0x13e   : > { %v458_v53 = vpop.permute.xlu1 %457  ;;  %v2679_v21 = vpop.permute.xlu2 %887 }
 0x13f   : > { %v462_v38 = vadd.f32 %v458_v53, %v448_v29  ;;  %v646_v8 = vpop.permute.xlu0 %645  ;;  %v1054_v29 = vadd.f32 %v1052_v28, %v1048_v14 }
 0x140   : > { %v650_v43 = vadd.f32 %v646_v8, %v636_v49  ;;  %v464_v49 = vld [vmem:[%s2802_s2 + $0x8] sm:$0xff]  ;;  %v1638_v8 = vld [vmem:[%s1842_s21 + $0x39] sm:$0xff] }
 0x141   : > { %706 = vrot.lane.b32.xlu2 %v462_v38, %s1742_s16  ;;  %v860_v38 = vadd.f32 %v858_v55, %v854_v3  ;;  %v864_v62 = vmul.f32 %v1638_v8, %v862_v44  ;;  %726 = vmatpush.msra.mxu3 %v464_v49  ;;  %v1060_v63 = vadd.f32 %v1058_v58, %v1054_v29  ;;  %v737_v3 = vld [vmem:[%s2803_s3 + $0x10] sm:$0xff] }
 0x142   : > { %v664_v23 = vadd.f32 %v660_v25, %v650_v43  ;;  %v1064_v1 = vmul.f32 %v1638_v8, %v1062_v10  ;;  %v1076_v10 = vmul.f32 %v1640_v39, %v1074_v11  ;;  %v1543_v8 = vld [vmem:[%s2803_s3 + $0x30] sm:$0xff] }
 0x143   : > { %v866_v17 = vadd.f32 %v864_v62, %v860_v38  ;;  %v1542_v38 = vld [vmem:[%s2803_s3 + $0x28] sm:$0xff]  ;;  %v1544_v62 = vld [vmem:[%s2803_s3 + $0x38] sm:$0xff] }
 0x144   : > { %672 = vrot.lane.b32.xlu1 %v664_v23, %s1743_s18  ;;  %v1639_v23 = vld [vmem:[%s1842_s21 + $0x51] sm:$0xff]  ;;  %v1066_v44 = vadd.f32 %v1064_v1, %v1060_v63  ;;  %s1308_s21 = scalar_lea.sflag [#allocation3], %s226_s0 }
 0x145   : > { %v870_v56 = vmul.f32 %v1639_v23, %v868_v0 }
 0x146   : > { %v1086_v59 = vpop.permute.xlu1 %1085  ;;  %v1142_v16 = vpop.permute.xlu2 %1141 }
 0x147   : > { %v886_v48 = vpop.permute.xlu0 %885  ;;  %v1091_v6 = vadd.f32 %v1086_v59, %v1077_v51  ;;  %v872_v54 = vadd.f32 %v870_v56, %v866_v17 }
 0x148   : > { %v891_v33 = vadd.f32 %v886_v48, %v877_v61 }
 0x149   : > { %v878_v26 = vadd.f32 %v876_v45, %v872_v54 }
 0x14a   : > { %v905_v24 = vadd.f32 %v2644_v19, %v891_v33  ;;  %v463_v19 = vld [vmem:[%s2802_s2] sm:$0xff] }
 0x14b   : > { %727 = vmatpush.msra.mxu3 %v463_v19  ;;  %v892_v0 = vadd.f32 %v2679_v21, %v878_v26 }
 0x14d   : > { %1206 = vmatpush.msrb.mxu3 %v464_v49 }
 0x14e   : > { %v914_v36 = vpop.permute.xlu1 %913  ;;  %v916_v41 = vpop.permute.xlu2 %915 }
 0x14f   : > { %v1100_v12 = vpop.permute.xlu0 %1099  ;;  %v919_v53 = vadd.f32 %v914_v36, %v905_v24  ;;  %1207 = vmatpush.msrb.mxu3 %v463_v19  ;;  %v1541_v19 = vld [vmem:[%s2803_s3 + $0x20] sm:$0xff] }
 0x150   : > { %v1105_v27 = vadd.f32 %v1100_v12, %v1091_v6 }
 0x152   : > { %v1119_v25 = vadd.f32 %v1114_v5, %v1105_v27  ;;  %v1070_v5 = vmul.f32 %v1639_v23, %v1068_v47 }
 0x154   : > { %v1072_v48 = vadd.f32 %v1070_v5, %v1066_v44 }
 0x156   : > { %v1128_v30 = vpop.permute.xlu1 %1127  ;;  %v1078_v46 = vadd.f32 %v1076_v10, %v1072_v48  ;;  %v1130_v6 = vpop.permute.xlu2 %1129 }
 0x157   : > { %v1133_v37 = vadd.f32 %v1128_v30, %v1119_v25  ;;  %v928_v60 = vpop.permute.xlu0 %927 }
 0x158   : > { %v933_v7 = vadd.f32 %v928_v60, %v919_v53 }
 0x159   : > { %v1147_v52 = vadd.f32 %v1142_v16, %v1133_v37 }
 0x15b   : > { %1151 = vrot.lane.b32.xlu0 %v1147_v52, %s1743_s18  ;;  %v735_v52 = vld [vmem:[%s2803_s3] sm:$0xff] }
 0x15e   : > { %v1088_v43 = vpop.permute.xlu1 %1087 }
 0x15f   : > { %v942_v32 = vpop.permute.xlu0 %941  ;;  %v1092_v15 = vadd.f32 %v1088_v43, %v1078_v46 }
 0x160   : > { %v947_v9 = vadd.f32 %v942_v32, %v933_v7 }
 0x162   : > { %1184 = vrot.lane.b32.xlu1 %v947_v9, %s1742_s16 }
 0x166   : > { %v1102_v59 = vpop.permute.xlu1 %1101 }
 0x167   : > { %v902_v35 = vpop.permute.xlu0 %901  ;;  %v1106_v40 = vadd.f32 %v1102_v59, %v1092_v15 }
 0x168   : > { %v906_v47 = vadd.f32 %v902_v35, %v892_v0 }
 0x16a   : > { %v920_v12 = vadd.f32 %v916_v41, %v906_v47 }
 0x16e   : > { %v930_v22 = vpop.permute.xlu1 %929 }
 0x16f   : > { %v1116_v51 = vpop.permute.xlu0 %1115  ;;  %v934_v2 = vadd.f32 %v930_v22, %v920_v12 }
 0x170   : > { %v1120_v36 = vadd.f32 %v1116_v51, %v1106_v40 }
 0x172   : > { %v1134_v20 = vadd.f32 %v1130_v6, %v1120_v36 }
 0x176   : > { %v1144_v13 = vpop.permute.xlu1 %1143 }
 0x177   : > { %v1148_v27 = vadd.f32 %v1144_v13, %v1134_v20  ;;  %v944_v11 = vpop.permute.xlu0 %943 }
 0x178   : > { %v948_v61 = vadd.f32 %v944_v11, %v934_v2 }
 0x179   : > { %1153 = vrot.lane.b32.xlu2 %v1148_v27, %s1743_s18 }
 0x17a   : > { %1186 = vrot.lane.b32.xlu0 %v948_v61, %s1742_s16 }
 0x17c   : > { %v671_v50 = vpop.permute.xlu2 %670 }
 0x17d   : > { %1486 = vmatmul.msk.f32.vlgmr.msra.gmra.mxu2 %vm674_vm0, %v671_v50 }
 0x18b   : > { %v705_v21 = vpop.permute.xlu0 %704 }
 0x18c   : > { %1488 = vmatmul.msk.f32.vlgmr.msra.gmra.mxu3 %vm674_vm0, %v705_v21 }
 0x19b   : > { %v707_v25 = vpop.permute.xlu2 %706 }
 0x19c   : > { %1489 = vmatmul.msk.f32.gmra.mxu3 %vm674_vm0, %v707_v25 }
 0x1b6   : > { %v673_v18 = vpop.permute.xlu1 %672 }
 0x1b7   : > { %1487 = vmatmul.msk.f32.gmra.mxu2 %vm674_vm0, %v673_v18 }
 0x1cd   : > { %v1152_v31 = vpop.permute.xlu0 %1151 }
 0x1ce   : > { %1537 = vmatmul.msk.f32.vlgmr.msrb.gmra.mxu2 %vm674_vm0, %v1152_v31 }
 0x1d3   : > { %v1154_v33 = vpop.permute.xlu2 %1153 }
 0x1d4   : > { %v1185_v4 = vpop.permute.xlu1 %1184 }
 0x1d5   : > { %1539 = vmatmul.msk.f32.vlgmr.msrb.gmra.mxu3 %vm674_vm0, %v1185_v4 }
 0x1d6   : > { %1538 = vmatmul.msk.f32.gmra.mxu2 %vm674_vm0, %v1154_v33 }
 0x1ec   : > { %v1187_v30 = vpop.permute.xlu0 %1186 }
 0x1ed   : > { %1540 = vmatmul.msk.f32.gmra.mxu3 %vm674_vm0, %v1187_v30 }
 0x200   : > { %v696_v16 = vpop.f32.mrf.mxu2 }
 0x20f   : > { %v729_v28 = vpop.f32.mrf.mxu3 }
 0x210   : > { %v730_v42 = vadd.f32 %v729_v28, %v696_v16 }
 0x21f   : > { %v732_v14 = vpop.f32.mrf.mxu3 }
 0x23a   : > { %v699_v37 = vpop.f32.mrf.mxu2 }
 0x23b   : > { %v733_v60 = vadd.f32 %v732_v14, %v699_v37 }
 0x23d   : > { %1287 = vmatpush.msra.mxu1 %v733_v60 }
 0x23f   : > { %1288 = vmatpush.msra.mxu1 %v730_v42 }
 0x240   : > { %1549 = vmatmul.msk.f32.vlgmr.msra.gmra.mxu1 %vm674_vm0, %v735_v52 }
 0x248   : > { %1550 = vmatmul.msk.f32.gmra.mxu1 %vm674_vm0, %v736_v34 }
 0x250   : > { %1551 = vmatmul.msk.f32.gmra.mxu1 %vm674_vm0, %v737_v3 }
 0x251   : > { %v1176_v55 = vpop.f32.mrf.mxu2 }
 0x258   : > { %v1209_v24 = vpop.f32.mrf.mxu3  ;;  %1552 = vmatmul.msk.f32.gmra.mxu1 %vm674_vm0, %v738_v57 }
 0x259   : > { %v1179_v58 = vpop.f32.mrf.mxu2  ;;  %v1210_v49 = vadd.f32 %v1209_v24, %v1176_v55 }
 0x270   : > { %v1212_v29 = vpop.f32.mrf.mxu3 }
 0x271   : > { %v1213_v53 = vadd.f32 %v1212_v29, %v1179_v58 }
 0x273   : > { %1246 = vmatpush.msra.mxu0 %v1213_v53 }
 0x275   : > { %1247 = vmatpush.msra.mxu0 %v1210_v49 }
 0x276   : > { %1545 = vmatmul.msk.f32.vlgmr.msra.gmra.mxu0 %vm674_vm0, %v1541_v19 }
 0x27e   : > { %1546 = vmatmul.msk.f32.gmra.mxu0 %vm674_vm0, %v1542_v38 }
 0x286   : > { %1547 = vmatmul.msk.f32.gmra.mxu0 %vm674_vm0, %v1543_v8 }
 0x28e   : > { %1548 = vmatmul.msk.f32.gmra.mxu0 %vm674_vm0, %v1544_v62 }
 0x2bd   : > { %v1290_v7 = vpop.f32.mrf.mxu1 }
 0x2c5   : > { %v1293_v1 = vpop.f32.mrf.mxu1 }
 0x2cd   : > { %v1296_v23 = vpop.f32.mrf.mxu1 }
 0x2d5   : > { %v1299_v5 = vpop.f32.mrf.mxu1 }
 0x2f3   : > { %v1249_v43 = vpop.f32.mrf.mxu0 }
 0x2f4   : > { %v1291_v63 = vadd.f32 %v1290_v7, %v1249_v43 }
 0x2f6   : > { %1303 = vst.msk [vmem:[%s228_s27] sm:$0xff] %vm1302_vm1, %v1291_v63 }
 0x2fb   : > { %v1252_v32 = vpop.f32.mrf.mxu0 }
 0x2fc   : > { %v1294_v9 = vadd.f32 %v1293_v1, %v1252_v32 }
 0x2fe   : > { %1304 = vst.msk [vmem:[%s228_s27 + $0x8] sm:$0xff] %vm1302_vm1, %v1294_v9 }
 0x303   : > { %v1255_v56 = vpop.f32.mrf.mxu0 }
 0x304   : > { %v1297_v17 = vadd.f32 %v1296_v23, %v1255_v56 }
 0x306   : > { %1305 = vst.msk [vmem:[%s228_s27 + $0x10] sm:$0xff] %vm1302_vm1, %v1297_v17 }
 0x30b   : > { %v1258_v44 = vpop.f32.mrf.mxu0 }
 0x30c   : > { %v1300_v39 = vadd.f32 %v1299_v5, %v1258_v44 }
 0x30e   : > { %1306 = vst.msk [vmem:[%s228_s27 + $0x18] sm:$0xff] %vm1302_vm1, %v1300_v39 }
 0x30f   : > { %1683 = shalt.err (!%p1680_p9)
}
 0x310   : > { %s1744_s9 = smov 128   ;;  %s1745_s16 = smov 8  }
 0x311   : > { %1564 = dma.vmem_to_hbm [thread:$0]  (%p1811_p4), %s1323_s6, 512, %s1325_s7, %s1308_s21, %s1744_s9, %s1744_s9, %s1745_s16  }
 0x312 PF: > { %s2851_s18 = sld [smem:[#allocation13_spill]] }
 0x313   : > { %s2852_s28 = sld [smem:[#allocation8_spill]] }
 0x318   : > { %p1576_p10 = scmp.ge.s32.totalorder %s2851_s18, 2 }
 0x319   : > { %s1339_s12 = sand.u32 1, %s2852_s28  }
 0x31a   : > { %p1571_p11 = pnand %p1576_p10, %p1818_p8  ;;  %s1340_s13 = scalar_lea.sflag [#allocation3], %s1339_s12 }
 0x31c   : > { %p1572_p12 = pneg %p1571_p11 }
 0x31e   : > { %1713 = dma.done.wait (%p1572_p12), %s1340_s13, 512  }
 0x31f   : > { %1715 = vsyncadd (%p1572_p12), %s1340_s13, 4294966784  ;;  %s18_s20 = sadd.s32 1, %s2851_s18   ;;  %s2854_s15 = sld [smem:[#allocation9_spill]] }
 0x320   : > { %p15_p13 = scmp.ge.s32.totalorder %s18_s20, 4   ;;  %s2855_s16 = sld [smem:[#allocation10_spill]] }
 0x321   : > { %s2856_s17 = sld [smem:[#allocation17_spill]] }
 0x322   : > { %s2857_s18 = sld [smem:[#allocation12_spill]]  ;;  %17 = sbr.rel (!%p15_p13) target bundleno = 9 (0x9), region = 82 }
 0x323   : > { %s2858_s19 = sld [smem:[#allocation14_spill]] }
 0x327   :  { %1346 = vsyncpa [#allocation3], 1 }
 0x328   :  { %1348 = vsyncpa [#allocation3 + $0x1], 1 }
 0x329   :  { %1349 = vsyncpa [#allocation4], 1 }
 0x32a   :  { %1351 = vsyncpa [#allocation4 + $0x1], 1 }

</bundles_post_ra>
